<compile_context>
chip_gen: v7x
topology: tpu7x:2x2x1
jax: 0.10.0
libtpu: 0.0.40
codegen_flags: <defaults>
</compile_context>

<pallas_src>
import jax
import jax.numpy as jnp
from jax import lax
from jax.experimental import pallas as pl
from jax.experimental.pallas import tpu as pltpu

INPUT_SIZE = 3072
HIDDEN_SIZE = 1000
H_PAD = 1024          # HIDDEN_SIZE padded up to a multiple of 128
NUM_CLASSES = 5
K_TILE = 768          # fc1 weight streamed in INPUT_SIZE // K_TILE = 4 chunks
BATCH = 8


def net_kernel(x_ref, w1_ref, b1_ref, w2_ref, b2_ref, o_ref, acc_ref):
    k = pl.program_id(1)

    @pl.when(k == 0)
    def _():
        acc_ref[...] = jnp.zeros_like(acc_ref)

    # fc1 partial: (tb, K_TILE) @ (K_TILE, H_PAD) in bf16, f32 MXU accumulation.
    x_bf16 = x_ref[...].astype(jnp.bfloat16)
    acc_ref[...] += jnp.dot(x_bf16, w1_ref[...],
                            preferred_element_type=jnp.float32)

    @pl.when(k == pl.num_programs(1) - 1)
    def _():
        # Finish fc1 (pad lanes of b1 are -1e30 -> exp() of pad lanes is 0).
        h = acc_ref[...] + b1_ref[...]

        # Softmax over the hidden axis (unnormalized).
        m = jnp.max(h, axis=-1, keepdims=True)
        e = jnp.exp(h - m)
        denom = jnp.sum(e, axis=-1, keepdims=True)

        # fc2 with (C, H_PAD) weight layout, contracting the hidden axis of both.
        # 1/denom is folded into the tiny (tb, C) result (matmul is linear per row);
        # exact divide -- denom is only (tb, 1), approx reciprocal buys nothing.
        out = lax.dot_general(
            e.astype(jnp.bfloat16), w2_ref[...],
            dimension_numbers=(((1,), (1,)), ((), ())),
            preferred_element_type=jnp.float32)
        out = out / denom + b2_ref[...]
        o_ref[...] = out.astype(o_ref.dtype)


def net_forward(x, w1_t, b1_p, w2_p, b2_p, *, batch_tile=None):
    B = x.shape[0]
    # v6e/v7x: 512 amortizes per-grid-step overhead; on v5e prefer batch_tile=256.
    tb = min(B, 512) if batch_tile is None else batch_tile
    assert B % tb == 0, "batch must be divisible by the batch tile"
    assert INPUT_SIZE % K_TILE == 0
    grid = (B // tb, INPUT_SIZE // K_TILE)

    x_bytes = x.size * x.dtype.itemsize
    bytes_accessed = (
        x_bytes + w1_t.size * 2 + b1_p.size * 4
        + w2_p.size * 2 + b2_p.size * 4 + B * NUM_CLASSES * 4)
    cost = pl.CostEstimate(
        flops=2 * B * INPUT_SIZE * H_PAD + 2 * B * H_PAD * NUM_CLASSES,
        transcendentals=B * H_PAD,
        bytes_accessed=bytes_accessed)

    return pl.pallas_call(
        net_kernel,
        out_shape=jax.ShapeDtypeStruct((B, NUM_CLASSES), jnp.float32),
        grid=grid,
        in_specs=[
            pl.BlockSpec((tb, K_TILE), lambda i, k: (i, k)),            # x chunk
            pl.BlockSpec((K_TILE, H_PAD), lambda i, k: (k, 0)),         # w1 chunk (bf16)
            pl.BlockSpec((1, H_PAD), lambda i, k: (0, 0)),              # b1 (f32, -1e30 pads)
            pl.BlockSpec((NUM_CLASSES, H_PAD), lambda i, k: (0, 0)),    # w2 (bf16)
            pl.BlockSpec((1, NUM_CLASSES), lambda i, k: (0, 0)),        # b2 (f32)
        ],
        out_specs=pl.BlockSpec((tb, NUM_CLASSES), lambda i, k: (i, 0)),
        scratch_shapes=[pltpu.VMEM((tb, H_PAD), jnp.float32)],          # fc1 accumulator
        compiler_params=pltpu.CompilerParams(
            dimension_semantics=("parallel", "arbitrary"),
            vmem_limit_bytes=48 << 20),
        cost_estimate=cost,
    )(x, w1_t, b1_p, w2_p, b2_p)


def init_params(key):
    # Logical f32 params, matching nn.Linear's layout (out_features, in_features)
    # and its default U(-1/sqrt(fan_in), 1/sqrt(fan_in)) init.
    k1, k2, k3, k4 = jax.random.split(key, 4)
    lim1 = 1.0 / jnp.sqrt(jnp.float32(INPUT_SIZE))
    lim2 = 1.0 / jnp.sqrt(jnp.float32(HIDDEN_SIZE))
    w1 = jax.random.uniform(k1, (HIDDEN_SIZE, INPUT_SIZE), jnp.float32, -lim1, lim1)
    b1 = jax.random.uniform(k2, (HIDDEN_SIZE,), jnp.float32, -lim1, lim1)
    w2 = jax.random.uniform(k3, (NUM_CLASSES, HIDDEN_SIZE), jnp.float32, -lim2, lim2)
    b2 = jax.random.uniform(k4, (NUM_CLASSES,), jnp.float32, -lim2, lim2)
    return w1, b1, w2, b2


def prepare_params(w1, b1, w2, b2):
    # Kernel-side layouts: transposed / padded / bf16 weights.
    w1_t = (jnp.zeros((INPUT_SIZE, H_PAD), jnp.float32)
            .at[:, :HIDDEN_SIZE].set(w1.T)).astype(jnp.bfloat16)
    # Pad lanes of the fc1 bias get -1e30 so exp() of those lanes is 0.
    # NOTE: must stay float32 -- do not cast b1_p to bf16 with the weights.
    b1_p = (jnp.full((1, H_PAD), -1e30, jnp.float32)
            .at[0, :HIDDEN_SIZE].set(b1))
    # w2 kept in (C, H_PAD) layout; pad hidden columns are zero.
    w2_p = (jnp.zeros((NUM_CLASSES, H_PAD), jnp.float32)
            .at[:, :HIDDEN_SIZE].set(w2)).astype(jnp.bfloat16)
    b2_p = b2.reshape(1, NUM_CLASSES).astype(jnp.float32)
    return w1_t, b1_p, w2_p, b2_p


def reference_forward(x, w1, b1, w2, b2):
    h = x @ w1.T + b1
    p = jax.nn.softmax(h, axis=-1)
    return p @ w2.T + b2


if __name__ == "__main__":
    key = jax.random.PRNGKey(0)
    kx, kp = jax.random.split(key)
    x = jax.random.normal(kx, (BATCH, INPUT_SIZE), dtype=jnp.float32)
    w1, b1, w2, b2 = init_params(kp)
    w1_t, b1_p, w2_p, b2_p = prepare_params(w1, b1, w2, b2)

    out = net_forward(x, w1_t, b1_p, w2_p, b2_p)
    out = jax.block_until_ready(out)

    ref = reference_forward(x, w1, b1, w2, b2)
    assert out.shape == (BATCH, NUM_CLASSES)
    # bf16 weights/activations -> modest tolerance vs the f32 reference
    # (tightened vs previous version now that the reciprocal is exact).
    assert jnp.allclose(out, ref, atol=2e-3, rtol=1e-2), float(jnp.abs(out - ref).max())

    print("KERNEL_OK")
</pallas_src>

<mosaic_0001>
module attributes {stable_mosaic.version = 11 : i64} {
  func.func @net_kernel(%arg0: i32, %arg1: i32, %arg2: memref<8x768xf32, #tpu.memory_space<vmem>>, %arg3: memref<768x1024xbf16, #tpu.memory_space<vmem>>, %arg4: memref<1x1024xf32, #tpu.memory_space<vmem>>, %arg5: memref<5x1024xbf16, #tpu.memory_space<vmem>>, %arg6: memref<1x5xf32, #tpu.memory_space<vmem>>, %arg7: memref<8x5xf32, #tpu.memory_space<vmem>>, %arg8: memref<8x1024xf32, #tpu.memory_space<vmem>>) attributes {dimension_semantics = [#tpu.dimension_semantics<parallel>, #tpu.dimension_semantics<arbitrary>], iteration_bounds = array<i64: 1, 4>, scalar_prefetch = 0 : i64, scratch_operands = 1 : i64, tpu.core_type = #tpu.core_type<tc>, window_params = [{transform_indices = @transform_0, window_bounds = array<i64: 8, 768>}, {transform_indices = @transform_1, window_bounds = array<i64: 768, 1024>}, {pipeline_mode = #tpu.pipeline_mode<synchronous>, transform_indices = @transform_2, window_bounds = array<i64: 1, 1024>}, {pipeline_mode = #tpu.pipeline_mode<synchronous>, transform_indices = @transform_3, window_bounds = array<i64: 5, 1024>}, {pipeline_mode = #tpu.pipeline_mode<synchronous>, transform_indices = @transform_4, window_bounds = array<i64: 1, 5>}, {transform_indices = @transform_5, window_bounds = array<i64: 8, 5>}]} {
    %c0_i32 = arith.constant 0 : i32
    %0 = arith.cmpi eq, %arg1, %c0_i32 : i32
    %1 = arith.extui %0 : i1 to i32
    %c0_i32_0 = arith.constant 0 : i32
    %2 = arith.cmpi ne, %1, %c0_i32_0 : i32
    scf.if %2 {
      %cst_9 = arith.constant 0.000000e+00 : f32
      %13 = vector.broadcast %cst_9 : f32 to vector<8x1024xf32>
      %c0_10 = arith.constant 0 : index
      %c0_11 = arith.constant 0 : index
      %14 = vector.load %arg8[%c0_10, %c0_11] : memref<8x1024xf32, #tpu.memory_space<vmem>>, vector<8x1024xf32>
      tpu.vector_store %arg8[%c0_10, %c0_11], %13 {strides = array<i32>} : memref<8x1024xf32, #tpu.memory_space<vmem>>, vector<8x1024xf32>,
    } else {
    }
    %c0 = arith.constant 0 : index
    %c0_1 = arith.constant 0 : index
    %3 = vector.load %arg2[%c0, %c0_1] : memref<8x768xf32, #tpu.memory_space<vmem>>, vector<8x768xf32>
    %4 = arith.truncf %3 : vector<8x768xf32> to vector<8x768xbf16>
    %c0_2 = arith.constant 0 : index
    %c0_3 = arith.constant 0 : index
    %5 = vector.load %arg8[%c0_2, %c0_3] : memref<8x1024xf32, #tpu.memory_space<vmem>>, vector<8x1024xf32>
    %c0_4 = arith.constant 0 : index
    %c0_5 = arith.constant 0 : index
    %6 = vector.load %arg3[%c0_4, %c0_5] : memref<768x1024xbf16, #tpu.memory_space<vmem>>, vector<768x1024xbf16>
    %cst = arith.constant dense<0.000000e+00> : vector<8x1024xf32>
    %7 = tpu.matmul %4, %6, %cst {dimension_numbers = #tpu.dot_dimension_numbers<[1], [0], [0], [1], [0, 0, 1, 1], [], []>} : vector<8x768xbf16>, vector<768x1024xbf16>, vector<8x1024xf32> -> vector<8x1024xf32>
    %8 = arith.addf %5, %7 : vector<8x1024xf32>
    %c0_6 = arith.constant 0 : index
    %c0_7 = arith.constant 0 : index
    %9 = vector.load %arg8[%c0_6, %c0_7] : memref<8x1024xf32, #tpu.memory_space<vmem>>, vector<8x1024xf32>
    tpu.vector_store %arg8[%c0_6, %c0_7], %8 {strides = array<i32>} : memref<8x1024xf32, #tpu.memory_space<vmem>>, vector<8x1024xf32>,
    %c3_i32 = arith.constant 3 : i32
    %10 = arith.cmpi eq, %arg1, %c3_i32 : i32
    %11 = arith.extui %10 : i1 to i32
    %c0_i32_8 = arith.constant 0 : i32
    %12 = arith.cmpi ne, %11, %c0_i32_8 : i32
    scf.if %12 {
      %c0_9 = arith.constant 0 : index
      %c0_10 = arith.constant 0 : index
      %13 = vector.load %arg8[%c0_9, %c0_10] : memref<8x1024xf32, #tpu.memory_space<vmem>>, vector<8x1024xf32>
      %c0_11 = arith.constant 0 : index
      %c0_12 = arith.constant 0 : index
      %14 = vector.load %arg4[%c0_11, %c0_12] : memref<1x1024xf32, #tpu.memory_space<vmem>>, vector<1x1024xf32>
      %15 = vector.broadcast %14 : vector<1x1024xf32> to vector<8x1024xf32>
      %16 = arith.addf %13, %15 : vector<8x1024xf32>
      %cst_13 = arith.constant dense<0xFF800000> : vector<8xf32>
      %17 = vector.multi_reduction <maximumf>, %16, %cst_13 [1] : vector<8x1024xf32> to vector<8xf32>
      %18 = vector.shape_cast %17 : vector<8xf32> to vector<8x1xf32>
      %19 = vector.broadcast %18 : vector<8x1xf32> to vector<8x1024xf32>
      %20 = arith.subf %16, %19 : vector<8x1024xf32>
      %21 = math.exp %20 : vector<8x1024xf32>
      %cst_14 = arith.constant dense<0.000000e+00> : vector<8xf32>
      %22 = vector.multi_reduction <add>, %21, %cst_14 [1] : vector<8x1024xf32> to vector<8xf32>
      %23 = vector.shape_cast %22 : vector<8xf32> to vector<8x1xf32>
      %24 = arith.truncf %21 : vector<8x1024xf32> to vector<8x1024xbf16>
      %c0_15 = arith.constant 0 : index
      %c0_16 = arith.constant 0 : index
      %25 = vector.load %arg5[%c0_15, %c0_16] : memref<5x1024xbf16, #tpu.memory_space<vmem>>, vector<5x1024xbf16>
      %cst_17 = arith.constant dense<0.000000e+00> : vector<8x5xf32>
      %26 = tpu.matmul %24, %25, %cst_17 {dimension_numbers = #tpu.dot_dimension_numbers<[1], [1], [0], [0], [0, 0, 1, 0], [], []>} : vector<8x1024xbf16>, vector<5x1024xbf16>, vector<8x5xf32> -> vector<8x5xf32>
      %27 = vector.broadcast %23 : vector<8x1xf32> to vector<8x5xf32>
      %28 = arith.divf %26, %27 : vector<8x5xf32>
      %c0_18 = arith.constant 0 : index
      %c0_19 = arith.constant 0 : index
      %29 = vector.load %arg6[%c0_18, %c0_19] : memref<1x5xf32, #tpu.memory_space<vmem>>, vector<1x5xf32>
      %30 = vector.broadcast %29 : vector<1x5xf32> to vector<8x5xf32>
      %31 = arith.addf %28, %30 : vector<8x5xf32>
      %c0_20 = arith.constant 0 : index
      %c0_21 = arith.constant 0 : index
      %32 = vector.load %arg7[%c0_20, %c0_21] : memref<8x5xf32, #tpu.memory_space<vmem>>, vector<8x5xf32>
      tpu.vector_store %arg7[%c0_20, %c0_21], %31 {strides = array<i32>} : memref<8x5xf32, #tpu.memory_space<vmem>>, vector<8x5xf32>,
    } else {
    }
    return
  }
  func.func @transform_0(%arg0: i32, %arg1: i32) -> (i32, i32) {
    %c0_i32 = arith.constant 0 : i32
    return %arg0, %arg1 : i32, i32
  }
  func.func @transform_1(%arg0: i32, %arg1: i32) -> (i32, i32) {
    %c0_i32 = arith.constant 0 : i32
    %c0_i32_0 = arith.constant 0 : i32
    return %arg1, %c0_i32 : i32, i32
  }
  func.func @transform_2(%arg0: i32, %arg1: i32) -> (i32, i32) {
    %c0_i32 = arith.constant 0 : i32
    %c0_i32_0 = arith.constant 0 : i32
    %c0_i32_1 = arith.constant 0 : i32
    return %c0_i32, %c0_i32_0 : i32, i32
  }
  func.func @transform_3(%arg0: i32, %arg1: i32) -> (i32, i32) {
    %c0_i32 = arith.constant 0 : i32
    %c0_i32_0 = arith.constant 0 : i32
    %c0_i32_1 = arith.constant 0 : i32
    return %c0_i32, %c0_i32_0 : i32, i32
  }
  func.func @transform_4(%arg0: i32, %arg1: i32) -> (i32, i32) {
    %c0_i32 = arith.constant 0 : i32
    %c0_i32_0 = arith.constant 0 : i32
    %c0_i32_1 = arith.constant 0 : i32
    return %c0_i32, %c0_i32_0 : i32, i32
  }
  func.func @transform_5(%arg0: i32, %arg1: i32) -> (i32, i32) {
    %c0_i32 = arith.constant 0 : i32
    %c0_i32_0 = arith.constant 0 : i32
    return %arg0, %c0_i32 : i32, i32
  }
}

</mosaic_0001>

<bundles_post_ra>
// kernel: tpu_custom_call.1
= control target key start
LH: loop header
LB: loop body
LE: loop exit
PB: predicated region body
PF: predicated region fallthrough
CT: control target
= control target key end

     0   :  { %10 = vsyncpa [#allocation4], 0  ;;  %s5172_s0 = inlined_call_operand.hbm [shape: f32[8,3072], index: 0, kind: input, shape index: {}]   ;;  %s5173_s1 = inlined_call_operand.hbm [shape: bf16[3072,1024], index: 1, kind: input, shape index: {}]   ;;  %s5174_s2 = inlined_call_operand.hbm [shape: f32[1,1024], index: 2, kind: input, shape index: {}]   ;;  %s5175_s3 = inlined_call_operand.hbm [shape: bf16[5,1024], index: 3, kind: input, shape index: {}]   ;;  %s5176_s4 = inlined_call_operand.hbm [shape: f32[1,5], index: 4, kind: input, shape index: {}]   ;;  %s5177_s5 = inlined_call_operand.hbm [shape: f32[8,5], index: 5, kind: output, shape index: {}]  }
   0x1   :  { %12 = vsyncpa [#allocation4 + $0x1], 0 }
   0x2   :  { %13 = vsyncpa [#allocation7], 0 }
   0x3   :  { %15 = vsyncpa [#allocation7 + $0x1], 0 }
   0x4   :  { %16 = vsyncpa [#allocation10], 0 }
   0x5   :  { %17 = vsyncpa [#allocation5], 0  ;;  %s4448_s18 = smov 0   ;;  %s4450_s19 = smov 0  }
   0x6   :  { %s4452_s20 = smov 0   ;;  %s4454_s21 = smov 0  }
   0x7   :  { %s4456_s22 = smov 0   ;;  %s4458_s23 = smov 0  }
   0x8 LB: > { %s4477_s24 = sadd.s32 4294967295, %s4407_s23   ;;  %p57_p0 = scmp.ne.s32.totalorder %s4391_s19, %s4387_s18  ;;  %s4407_s23 = sphi %s4458_s23, %s23_s23   ;;  %s4403_s22 = sphi %s4456_s22, %s5197_s22   ;;  %s4399_s21 = sphi %s4454_s21, %s5196_s21   ;;  %s4395_s20 = sphi %s4452_s20, %s5195_s20   ;;  %s4391_s19 = sphi %s4450_s19, %s5194_s19   ;;  %s4387_s18 = sphi %s4448_s18, %s5193_s18  }
   0x9   : > { %p5178_p1 = scmp.eq.s32.totalorder %s4477_s24, 0  ;;  %p3616_p2 = scmp.ge.s32.totalorder %s4407_s23, 1 }
   0xa   : > { %p183_p3 = scmp.lt.s32.totalorder %s4407_s23, 5  ;;  %s4409_s27 = smov [#allocation8]  }
   0xb   : > { %p4485_p4 = por %p5178_p1, %p57_p0  ;;  %s196_s28 = sshll.u32 %s4409_s27, 4  ;;  %s197_s28 = int_to_ptr.vmem [resolvable:$true] %s196_s28 }
   0xc   : > { %p4489_p5 = pnand %p3616_p2, %p183_p3  ;;  %s4410_s29 = smov [#allocation9]  }
   0xd   : > { %s5181_s25 = scalar_select %p4485_p4, 1, 0 }
   0xe   : > { %s5182_s26 = scalar_select %p4489_p5, 1, 0 }
   0xf   : > { %p4064_p6 = pneg %p4489_p5  ;;  %s207_s30 = sshll.u32 %s4410_s29, 4  ;;  %s4501_s30 = int_to_ptr.vmem [resolvable:$true] %s207_s30 }
  0x10   : > { %s4411_s7 = smov [#allocation11]   ;;  %s4171_s11 = scalar_lea.hbm %s5174_s2, 128 }
  0x11   : > { %p4497_p7 = pnand %p4064_p6, %p5178_p1  ;;  %s218_s8 = sshll.u32 %s4411_s7, 4  ;;  %s4503_s8 = int_to_ptr.vmem [resolvable:$true] %s218_s8 }
  0x12   : > { %p4172_p8 = scmp.ne.s32.totalorder %s5174_s2, %s4171_s11  ;;  %p4178_p12 = scmp.lt.u32.totalorder %s4171_s11, %s5174_s2 }
  0x13   : > { %p4513_p9 = pneg %p4497_p7 }
  0x15   : > { %p4174_p10 = pnand %p4513_p9, %p4172_p8 }
  0x17   : > { %p4175_p11 = pneg %p4174_p10 }
  0x19   : > { %p4180_p13 = pnand %p4178_p12, %p4175_p11 }
  0x1b   : > { %4183 = shalt.err (!%p4180_p13)
}
  0x1c   : > { %s4184_s17 = scalar_lea.vmem %s197_s28, 128  ;;  %p4192_p6 = scmp.lt.s32.totalorder %s197_s28, %s197_s28 }
  0x1d   : > { %p4185_p0 = scmp.ne.s32.totalorder %s197_s28, %s4184_s17  ;;  %p4193_p1 = scmp.lt.s32.totalorder %s4184_s17, %s4184_s17 }
  0x1f   : > { %p4187_p2 = pnand %p4185_p0, %p4513_p9  ;;  %p4194_p4 = por %p4193_p1, %p4192_p6 }
  0x21   : > { %p4188_p3 = pneg %p4187_p2 }
  0x23   : > { %p4195_p5 = pnand %p4194_p4, %p4188_p3 }
  0x25   : > { %4198 = shalt.err (!%p4195_p5)
}
  0x26   : > { %4067 = dma.hbm_to_vmem [thread:$0]  (!%p4497_p7), %s5174_s2, 128, %s197_s28, [#allocation7]  }
  0x27   : > { %s4199_s9 = scalar_lea.hbm %s5175_s3, 512 }
  0x28   : > { %p4200_p8 = scmp.ne.s32.totalorder %s5175_s3, %s4199_s9  ;;  %p4206_p4 = scmp.lt.u32.totalorder %s4199_s9, %s5175_s3 }
  0x2a   : > { %p4202_p10 = pnand %p4200_p8, %p4513_p9 }
  0x2c   : > { %p4203_p1 = pneg %p4202_p10 }
  0x2e   : > { %p4208_p5 = pnand %p4206_p4, %p4203_p1 }
  0x30   : > { %4211 = shalt.err (!%p4208_p5)
}
  0x31   : > { %s4212_s28 = scalar_lea.vmem %s4501_s30, 512  ;;  %p4220_p0 = scmp.lt.s32.totalorder %s4501_s30, %s4501_s30 }
  0x32   : > { %p4213_p11 = scmp.ne.s32.totalorder %s4501_s30, %s4212_s28  ;;  %p4221_p2 = scmp.lt.s32.totalorder %s4212_s28, %s4212_s28 }
  0x34   : > { %p4215_p12 = pnand %p4213_p11, %p4513_p9  ;;  %p4222_p3 = por %p4221_p2, %p4220_p0 }
  0x36   : > { %p4216_p13 = pneg %p4215_p12 }
  0x38   : > { %p4223_p6 = pnand %p4222_p3, %p4216_p13 }
  0x3a   : > { %4226 = shalt.err (!%p4223_p6)
}
  0x3b   : > { %4070 = dma.hbm_to_vmem [thread:$0]  (!%p4497_p7), %s5175_s3, 512, %s4501_s30, [#allocation10]  }
  0x3c   : > { %s4227_s27 = scalar_lea.hbm %s5176_s4, 16 }
  0x3d   : > { %p4228_p8 = scmp.ne.s32.totalorder %s5176_s4, %s4227_s27  ;;  %p4234_p4 = scmp.lt.u32.totalorder %s4227_s27, %s5176_s4 }
  0x3f   : > { %p4230_p10 = pnand %p4228_p8, %p4513_p9 }
  0x41   : > { %p4231_p1 = pneg %p4230_p10 }
  0x43   : > { %p4236_p5 = pnand %p4234_p4, %p4231_p1 }
  0x45   : > { %4239 = shalt.err (!%p4236_p5)
}
  0x46   : > { %s4240_s30 = scalar_lea.vmem %s4503_s8, 16  ;;  %s4247_s11 = scalar_lea.vmem %s4503_s8, 32 }
  0x47   : > { %p4241_p11 = scmp.ne.s32.totalorder %s4503_s8, %s4240_s30  ;;  %p4248_p0 = scmp.lt.s32.totalorder %s4503_s8, %s4503_s8 }
  0x48   : > { %p4249_p2 = scmp.lt.s32.totalorder %s4247_s11, %s4240_s30 }
  0x49   : > { %p4243_p12 = pnand %p4241_p11, %p4513_p9 }
  0x4a   : > { %p4250_p3 = por %p4249_p2, %p4248_p0 }
  0x4b   : > { %p4244_p13 = pneg %p4243_p12 }
  0x4d   : > { %p4251_p6 = pnand %p4250_p3, %p4244_p13 }
  0x4f   : > { %4254 = shalt.err (!%p4251_p6)
}
  0x50   : > { %4073 = dma.hbm_to_vmem [thread:$0]  (!%p4497_p7), %s5176_s4, 16, %s4503_s8, [#allocation10]  }
  0x51   : > { %s44_s14 = sadd.s32 1, %s4395_s20  ;;  %s32_s28 = sadd.s32 1, %s4403_s22 }
  0x52   : > { %p51_p9 = scmp.ne.s32.totalorder %s4395_s20, %s4391_s19  ;;  %p33_p8 = scmp.ge.s32.totalorder %s32_s28, 4 }
  0x53   : > { %p52_p10 = scmp.eq.s32.totalorder %s4407_s23, 0  ;;  %p4084_p1 = scmp.lt.s32.totalorder %s4407_s23, 4 }
  0x54   : > { %s4583_s6 = sand.u32 1, %s4395_s20   ;;  %s5199_s28 = smov (%p33_p8, %s32_s28), 0 }
  0x55   : > { %p53_p4 = por %p52_p10, %p51_p9  ;;  %s40_s15 = ssub.s32 %s4403_s22, %s5199_s28 }
  0x56   : > { %s4040_s16 = smul.u32 48, %s4583_s6  ;;  %p42_p5 = scmp.eq.s32.totalorder %s40_s15, 0 }
  0x57   : > { %s4027_s17 = smul.u32 768, %s4403_s22  ;;  %p4591_p11 = pnand %p4084_p1, %p53_p4 }
  0x58   : > { %s4596_s18 = scalar_select %p42_p5, %s4395_s20, %s44_s14  }
  0x59   : > { %s4601_s7 = scalar_lea.hbm %s5172_s0, %s4027_s17  ;;  %s233_s9 = scalar_lea.vmem [#allocation3], %s4040_s16 }
  0x5a   : > { %s243_s10 = sshll.u32 %s233_s9, 4  ;;  %s230_s30 = scalar_lea.sflag [#allocation4], %s4583_s6  ;;  %s4603_s10 = int_to_ptr.vmem [resolvable:$true] %s243_s10 }
  0x5b   : > { %s4255_s11 = scalar_lea.hbm %s4601_s7, 768  ;;  %p4257_p12 = pneg %p4591_p11 }
  0x5c   : > { %p4256_p7 = scmp.ne.s32.totalorder %s4601_s7, %s4255_s11  ;;  %s4260_s14 = scalar_lea.hbm %s5172_s0, 3072 }
  0x5d   : > { %p4261_p2 = scmp.lt.u32.totalorder %s4601_s7, %s5172_s0  ;;  %p4262_p3 = scmp.lt.u32.totalorder %s4260_s14, %s4255_s11 }
  0x5e   : > { %p4258_p13 = pnand %p4257_p12, %p4256_p7  ;;  %p4264_p9 = scmp.lt.u32.totalorder %s4255_s11, %s4601_s7 }
  0x5f   : > { %p4263_p6 = por %p4262_p3, %p4261_p2 }
  0x60   : > { %p4259_p0 = pneg %p4258_p13 }
  0x61   : > { %p4265_p8 = por %p4264_p9, %p4263_p6 }
  0x63   : > { %p4266_p10 = pnand %p4265_p8, %p4259_p0 }
  0x65   : > { %4269 = shalt.err (!%p4266_p10)
}
  0x66   : > { %s4270_s16 = scalar_lea.vmem %s4603_s10, 768  ;;  %s4412_s27 = smov [#allocation3]  }
  0x67   : > { %p4271_p1 = scmp.ne.s32.totalorder %s4603_s10, %s4270_s16  ;;  %s4275_s29 = sshll.u32 %s4412_s27, 4  ;;  %s4276_s29 = int_to_ptr.vmem [resolvable:$false] %s4275_s29 }
  0x68   : > { %s4277_s9 = scalar_lea.vmem %s4276_s29, 1536  ;;  %p4278_p7 = scmp.lt.s32.totalorder %s4603_s10, %s4276_s29 }
  0x69   : > { %p4273_p4 = pnand %p4271_p1, %p4257_p12  ;;  %p4279_p13 = scmp.lt.s32.totalorder %s4277_s9, %s4270_s16 }
  0x6b   : > { %p4274_p5 = pneg %p4273_p4  ;;  %p4280_p2 = por %p4279_p13, %p4278_p7 }
  0x6d   : > { %p4281_p3 = pnand %p4280_p2, %p4274_p5 }
  0x6f   : > { %4284 = shalt.err (!%p4281_p3)
}
  0x70   : > { %4077 = dma.hbm_to_vmem [thread:$0]  (!%p4591_p11), %s4601_s7, 768, %s4603_s10, %s230_s30  }
  0x71   : > { %s4041_s11 = smul.u32 3072, %s4583_s6  ;;  %s250_s12 = sand.u32 1, %s4407_s23  }
  0x72   : > { %s4030_s13 = smul.u32 49152, %s4403_s22  ;;  %s4641_s29 = scalar_lea.sflag [#allocation7], %s250_s12 }
  0x73   : > { %s254_s14 = scalar_lea.vmem [#allocation6], %s4041_s11  ;;  %s4290_s10 = scalar_lea.hbm %s5173_s1, 196608 }
  0x74   : > { %s262_s15 = sshll.u32 %s254_s14, 4  ;;  %s4637_s16 = scalar_lea.hbm %s5173_s1, %s4030_s13  ;;  %s4639_s15 = int_to_ptr.vmem [resolvable:$true] %s262_s15 }
  0x75   : > { %s4285_s9 = scalar_lea.hbm %s4637_s16, 49152  ;;  %p4291_p8 = scmp.lt.u32.totalorder %s4637_s16, %s5173_s1 }
  0x76   : > { %p4286_p0 = scmp.ne.s32.totalorder %s4637_s16, %s4285_s9  ;;  %p4292_p10 = scmp.lt.u32.totalorder %s4290_s10, %s4285_s9 }
  0x77   : > { %p4294_p4 = scmp.lt.u32.totalorder %s4285_s9, %s4637_s16 }
  0x78   : > { %p4288_p6 = pnand %p4286_p0, %p4257_p12  ;;  %p4293_p1 = por %p4292_p10, %p4291_p8 }
  0x7a   : > { %p4289_p9 = pneg %p4288_p6  ;;  %p4295_p5 = por %p4294_p4, %p4293_p1 }
  0x7c   : > { %p4296_p7 = pnand %p4295_p5, %p4289_p9 }
  0x7e   : > { %4299 = shalt.err (!%p4296_p7)
}
  0x7f   : > { %s4300_s12 = scalar_lea.vmem %s4639_s15, 49152  ;;  %s4413_s13 = smov [#allocation6]  }
  0x80   : > { %p4301_p13 = scmp.ne.s32.totalorder %s4639_s15, %s4300_s12  ;;  %s4305_s14 = sshll.u32 %s4413_s13, 4  ;;  %s4306_s14 = int_to_ptr.vmem [resolvable:$false] %s4305_s14 }
  0x81   : > { %s4307_s17 = scalar_lea.vmem %s4306_s14, 98304  ;;  %p4308_p0 = scmp.lt.s32.totalorder %s4639_s15, %s4306_s14 }
  0x82   : > { %p4303_p2 = pnand %p4301_p13, %p4257_p12  ;;  %p4309_p6 = scmp.lt.s32.totalorder %s4307_s17, %s4300_s12 }
  0x84   : > { %p4304_p3 = pneg %p4303_p2  ;;  %p4310_p8 = por %p4309_p6, %p4308_p0 }
  0x86   : > { %p4311_p10 = pnand %p4310_p8, %p4304_p3 }
  0x88   : > { %4314 = shalt.err (!%p4311_p10)
}
  0x89   : > { %s4414_s27 = smov 512   ;;  %s4415_s9 = smov 32  }
  0x8a   : > { %4080 = dma.hbm_to_vmem [thread:$0]  (!%p4591_p11), %s4637_s16, 49152, %s4639_s15, %s4641_s29, %s4414_s27, %s4414_s27, %s4415_s9  }
  0x8b   : > { %p5186_p12 = scmp.ne.s32.totalorder %s5182_s26, 0 }
  0x8c   : > { %s276_s6 = sand.u32 (!%p5186_p12), 1, %s4391_s19   ;;  %p5187_p9 = scmp.ne.s32.totalorder (!%p5186_p12), %s5181_s25, 0 }
  0x8d   : > { %274 = sbr.rel (%p5186_p12) target bundleno = 1212 (0x4bc), region = 40  ;;  %s277_s10 = scalar_lea.sflag (!%p5186_p12), [#allocation4], %s276_s6 }
  0x8e   : > { %s4042_s7 = smul.u32 (!%p5186_p12), 48, %s276_s6 }
  0x90   : > { %s4670_s30 = scalar_lea.vmem (!%p5186_p12), [#allocation3], %s4042_s7 }
  0x94   : > { %4366 = dma.done.wait (%p5187_p9), %s277_s10, 768  }
  0x95   : > { %4368 = vsyncadd (%p5187_p9), %s277_s10, 4294966528  ;;  %s285_s11 = sand.u32 1, %s4477_s24   ;;  %s4043_s8 = smul.u32 3072, %s276_s6 }
  0x96   : > { %s286_s15 = scalar_lea.sflag [#allocation7], %s285_s11 }
  0x97   : > { %s4677_s16 = scalar_lea.vmem [#allocation6], %s4043_s8 }
  0x98   : > { %4370 = dma.done.wait (%p5187_p9), %s286_s15, 49152  }
  0x99   : > { %4372 = vsyncadd (%p5187_p9), %s286_s15, 4294918144  ;;  %p5188_p11 = scmp.eq.s32.totalorder %s4477_s24, 0 }
  0x9b   : > { %4374 = dma.done.wait (%p5188_p11), [#allocation7], 128   ;;  %p5189_p1 = pmov %p5188_p11 }
  0x9d   : > { %4376 = vsyncadd (%p5189_p1), [#allocation7], 4294967168  ;;  %p5190_p4 = pmov %p5189_p1 }
  0x9e   : > { %p5191_p5 = pmov %p5189_p1 }
  0x9f   : > { %4378 = dma.done.wait (%p5190_p4), [#allocation10], 528  }
  0xa0   : > { %4380 = vsyncadd (%p5191_p5), [#allocation10], 4294966768  ;;  %p3628_p7 = scmp.ne.s32.totalorder %s4399_s21, 0 }
  0xa1   : > { %v4416_v0 = vmov (!%p3628_p7), 0.0  }
  0xa2   : > { %334 = sbr.rel (%p3628_p7) target bundleno = 169 (0xa9), region = 64  ;;  %335 = vst [vmem:[#allocation2] sm:$0xff] (!%p3628_p7), %v4416_v0  ;;  %336 = vst [vmem:[#allocation2 + $0x8] sm:$0xff] (!%p3628_p7), %v4416_v0 }
  0xa3   : > { %337 = vst [vmem:[#allocation2 + $0x10] sm:$0xff] (!%p3628_p7), %v4416_v0  ;;  %338 = vst [vmem:[#allocation2 + $0x18] sm:$0xff] (!%p3628_p7), %v4416_v0 }
  0xa4   : > { %339 = vst [vmem:[#allocation2 + $0x20] sm:$0xff] (!%p3628_p7), %v4416_v0  ;;  %340 = vst [vmem:[#allocation2 + $0x28] sm:$0xff] (!%p3628_p7), %v4416_v0 }
  0xa5   : > { %341 = vst [vmem:[#allocation2 + $0x30] sm:$0xff] (!%p3628_p7), %v4416_v0  ;;  %342 = vst [vmem:[#allocation2 + $0x38] sm:$0xff] (!%p3628_p7), %v4416_v0 }
  0xa9 PF: > { %v363_v1 = vld [vmem:[%s4677_s16] sm:$0xff]  ;;  %v344_v54 = vld [vmem:[%s4670_s30 + $0x8] sm:$0xff]  ;;  %v346_v55 = vld [vmem:[%s4670_s30 + $0x18] sm:$0xff]  ;;  %p4013_p13 = scmp.ne.s32.totalorder %s4399_s21, 3 }
  0xaa   : > { %v367_v2 = vld [vmem:[%s4677_s16 + $0x20] sm:$0xff]  ;;  %v4724_v59 = vpack.c.bf16 %v344_v54, %v344_v54  ;;  %v4726_v60 = vpack.c.bf16 %v346_v55, %v346_v55  ;;  %vm3489_vm0 = vcmask (!%p4013_p13), 39936  }
  0xab   : > { %v491_v3 = vld [vmem:[%s4677_s16 + $0x400] sm:$0xff]  ;;  %v3630_v4 = vcombine.high %v363_v1, %v367_v2  ;;  %v3629_v6 = vcombine.low %v363_v1, %v367_v2 }
  0xac   : > { %v495_v5 = vld [vmem:[%s4677_s16 + $0x420] sm:$0xff]  ;;  %2699 = vmatprep.mubr.bf16.mxu0 %v4724_v59  ;;  %2740 = vmatprep.mubr.bf16.mxu1 %v4726_v60 }
  0xad   : > { %v371_v7 = vld [vmem:[%s4677_s16 + $0x40] sm:$0xff]  ;;  %v3758_v9 = vcombine.high %v491_v3, %v495_v5  ;;  %v3757_v10 = vcombine.low %v491_v3, %v495_v5  ;;  %2667 = vmatprep.subr.bf16.mxu0 %v3630_v4 }
  0xae   : > { %v375_v8 = vld [vmem:[%s4677_s16 + $0x60] sm:$0xff]  ;;  %2668 = vmatpush1.bf16.msra.mxu0 %v3629_v6 }
  0xaf   : > { %v3638_v11 = vcombine.high %v371_v7, %v375_v8  ;;  %v499_v12 = vld [vmem:[%s4677_s16 + $0x440] sm:$0xff]  ;;  %2708 = vmatprep.subr.bf16.mxu1 %v3758_v9  ;;  %v3637_v19 = vcombine.low %v371_v7, %v375_v8 }
  0xb0   : > { %v503_v13 = vld [vmem:[%s4677_s16 + $0x460] sm:$0xff]  ;;  %2709 = vmatpush1.bf16.msra.mxu1 %v3757_v10 }
  0xb1   : > { %v379_v14 = vld [vmem:[%s4677_s16 + $0x80] sm:$0xff]  ;;  %v3766_v15 = vcombine.high %v499_v12, %v503_v13  ;;  %2669 = vmatprep.subr.bf16.mxu0 %v3638_v11  ;;  %v3765_v20 = vcombine.low %v499_v12, %v503_v13 }
  0xb2   : > { %v383_v16 = vld [vmem:[%s4677_s16 + $0xa0] sm:$0xff]  ;;  %2670 = vmatpush1.bf16.msra.mxu0 %v3637_v19 }
  0xb3   : > { %v507_v17 = vld [vmem:[%s4677_s16 + $0x480] sm:$0xff]  ;;  %v3646_v21 = vcombine.high %v379_v14, %v383_v16  ;;  %2710 = vmatprep.subr.bf16.mxu1 %v3766_v15  ;;  %v3645_v27 = vcombine.low %v379_v14, %v383_v16 }
  0xb4   : > { %v511_v18 = vld [vmem:[%s4677_s16 + $0x4a0] sm:$0xff]  ;;  %2711 = vmatpush1.bf16.msra.mxu1 %v3765_v20 }
  0xb5   : > { %v3774_v22 = vcombine.high %v507_v17, %v511_v18  ;;  %v387_v23 = vld [vmem:[%s4677_s16 + $0xc0] sm:$0xff]  ;;  %2671 = vmatprep.subr.bf16.mxu0 %v3646_v21  ;;  %v3773_v28 = vcombine.low %v507_v17, %v511_v18 }
  0xb6   : > { %v391_v24 = vld [vmem:[%s4677_s16 + $0xe0] sm:$0xff]  ;;  %2672 = vmatpush1.bf16.msra.mxu0 %v3645_v27 }
  0xb7   : > { %v515_v25 = vld [vmem:[%s4677_s16 + $0x4c0] sm:$0xff]  ;;  %v3654_v29 = vcombine.high %v387_v23, %v391_v24  ;;  %2712 = vmatprep.subr.bf16.mxu1 %v3774_v22  ;;  %v3653_v35 = vcombine.low %v387_v23, %v391_v24 }
  0xb8   : > { %v519_v26 = vld [vmem:[%s4677_s16 + $0x4e0] sm:$0xff]  ;;  %2713 = vmatpush1.bf16.msra.mxu1 %v3773_v28 }
  0xb9   : > { %v3782_v30 = vcombine.high %v515_v25, %v519_v26  ;;  %v395_v31 = vld [vmem:[%s4677_s16 + $0x100] sm:$0xff]  ;;  %2673 = vmatprep.subr.bf16.mxu0 %v3654_v29  ;;  %v3781_v36 = vcombine.low %v515_v25, %v519_v26 }
  0xba   : > { %v399_v32 = vld [vmem:[%s4677_s16 + $0x120] sm:$0xff]  ;;  %2674 = vmatpush1.bf16.msra.mxu0 %v3653_v35 }
  0xbb   : > { %v523_v33 = vld [vmem:[%s4677_s16 + $0x500] sm:$0xff]  ;;  %v3662_v37 = vcombine.high %v395_v31, %v399_v32  ;;  %2714 = vmatprep.subr.bf16.mxu1 %v3782_v30  ;;  %v3661_v43 = vcombine.low %v395_v31, %v399_v32 }
  0xbc   : > { %v527_v34 = vld [vmem:[%s4677_s16 + $0x520] sm:$0xff]  ;;  %2715 = vmatpush1.bf16.msra.mxu1 %v3781_v36 }
  0xbd   : > { %v3790_v38 = vcombine.high %v523_v33, %v527_v34  ;;  %v403_v39 = vld [vmem:[%s4677_s16 + $0x140] sm:$0xff]  ;;  %2675 = vmatprep.subr.bf16.mxu0 %v3662_v37  ;;  %v3789_v44 = vcombine.low %v523_v33, %v527_v34 }
  0xbe   : > { %v407_v40 = vld [vmem:[%s4677_s16 + $0x160] sm:$0xff]  ;;  %2676 = vmatpush1.bf16.msra.mxu0 %v3661_v43 }
  0xbf   : > { %v531_v41 = vld [vmem:[%s4677_s16 + $0x540] sm:$0xff]  ;;  %v3670_v45 = vcombine.high %v403_v39, %v407_v40  ;;  %2716 = vmatprep.subr.bf16.mxu1 %v3790_v38  ;;  %v3669_v51 = vcombine.low %v403_v39, %v407_v40 }
  0xc0   : > { %v535_v42 = vld [vmem:[%s4677_s16 + $0x560] sm:$0xff]  ;;  %2717 = vmatpush1.bf16.msra.mxu1 %v3789_v44 }
  0xc1   : > { %v3798_v46 = vcombine.high %v531_v41, %v535_v42  ;;  %v411_v47 = vld [vmem:[%s4677_s16 + $0x180] sm:$0xff]  ;;  %2677 = vmatprep.subr.bf16.mxu0 %v3670_v45  ;;  %v3797_v52 = vcombine.low %v531_v41, %v535_v42 }
  0xc2   : > { %v415_v48 = vld [vmem:[%s4677_s16 + $0x1a0] sm:$0xff]  ;;  %2678 = vmatpush1.bf16.msra.mxu0 %v3669_v51 }
  0xc3   : > { %v539_v49 = vld [vmem:[%s4677_s16 + $0x580] sm:$0xff]  ;;  %v3678_v53 = vcombine.high %v411_v47, %v415_v48  ;;  %2718 = vmatprep.subr.bf16.mxu1 %v3798_v46  ;;  %v3677_v63 = vcombine.low %v411_v47, %v415_v48 }
  0xc4   : > { %v543_v50 = vld [vmem:[%s4677_s16 + $0x5a0] sm:$0xff]  ;;  %2719 = vmatpush1.bf16.msra.mxu1 %v3797_v52 }
  0xc5   : > { %v3806_v56 = vcombine.high %v539_v49, %v543_v50  ;;  %v419_v57 = vld [vmem:[%s4677_s16 + $0x1c0] sm:$0xff]  ;;  %2679 = vmatprep.subr.bf16.mxu0 %v3678_v53  ;;  %v3805_v0 = vcombine.low %v539_v49, %v543_v50 }
  0xc6   : > { %v423_v58 = vld [vmem:[%s4677_s16 + $0x1e0] sm:$0xff]  ;;  %2680 = vmatpush1.bf16.msra.mxu0 %v3677_v63 }
  0xc7   : > { %v547_v61 = vld [vmem:[%s4677_s16 + $0x5c0] sm:$0xff]  ;;  %v3686_v1 = vcombine.high %v419_v57, %v423_v58  ;;  %2720 = vmatprep.subr.bf16.mxu1 %v3806_v56  ;;  %v3685_v7 = vcombine.low %v419_v57, %v423_v58 }
  0xc8   : > { %v551_v62 = vld [vmem:[%s4677_s16 + $0x5e0] sm:$0xff]  ;;  %2721 = vmatpush1.bf16.msra.mxu1 %v3805_v0 }
  0xc9   : > { %v3814_v2 = vcombine.high %v547_v61, %v551_v62  ;;  %v427_v3 = vld [vmem:[%s4677_s16 + $0x200] sm:$0xff]  ;;  %2681 = vmatprep.subr.bf16.mxu0 %v3686_v1  ;;  %v3813_v8 = vcombine.low %v547_v61, %v551_v62 }
  0xca   : > { %v431_v4 = vld [vmem:[%s4677_s16 + $0x220] sm:$0xff]  ;;  %2682 = vmatpush1.bf16.msra.mxu0 %v3685_v7  ;;  %v364_v7 = vld [vmem:[%s4677_s16 + $0x8] sm:$0xff] }
  0xcb   : > { %v555_v5 = vld [vmem:[%s4677_s16 + $0x600] sm:$0xff]  ;;  %v3694_v9 = vcombine.high %v427_v3, %v431_v4  ;;  %2722 = vmatprep.subr.bf16.mxu1 %v3814_v2  ;;  %v3693_v15 = vcombine.low %v427_v3, %v431_v4 }
  0xcc   : > { %v559_v6 = vld [vmem:[%s4677_s16 + $0x620] sm:$0xff]  ;;  %2723 = vmatpush1.bf16.msra.mxu1 %v3813_v8  ;;  %v368_v8 = vld [vmem:[%s4677_s16 + $0x28] sm:$0xff] }
  0xcd   : > { %v3822_v10 = vcombine.high %v555_v5, %v559_v6  ;;  %v435_v11 = vld [vmem:[%s4677_s16 + $0x240] sm:$0xff]  ;;  %2683 = vmatprep.subr.bf16.mxu0 %v3694_v9  ;;  %v3821_v16 = vcombine.low %v555_v5, %v559_v6 }
  0xce   : > { %v439_v12 = vld [vmem:[%s4677_s16 + $0x260] sm:$0xff]  ;;  %2684 = vmatpush1.bf16.msra.mxu0 %v3693_v15 }
  0xcf   : > { %v563_v13 = vld [vmem:[%s4677_s16 + $0x640] sm:$0xff]  ;;  %v3702_v17 = vcombine.high %v435_v11, %v439_v12  ;;  %2724 = vmatprep.subr.bf16.mxu1 %v3822_v10  ;;  %v3701_v23 = vcombine.low %v435_v11, %v439_v12 }
  0xd0   : > { %v567_v14 = vld [vmem:[%s4677_s16 + $0x660] sm:$0xff]  ;;  %2725 = vmatpush1.bf16.msra.mxu1 %v3821_v16 }
  0xd1   : > { %v3830_v18 = vcombine.high %v563_v13, %v567_v14  ;;  %v443_v19 = vld [vmem:[%s4677_s16 + $0x280] sm:$0xff]  ;;  %2685 = vmatprep.subr.bf16.mxu0 %v3702_v17  ;;  %v3829_v24 = vcombine.low %v563_v13, %v567_v14  ;;  %v3632_v14 = vcombine.high %v364_v7, %v368_v8 }
  0xd2   : > { %v447_v20 = vld [vmem:[%s4677_s16 + $0x2a0] sm:$0xff]  ;;  %2686 = vmatpush1.bf16.msra.mxu0 %v3701_v23  ;;  %v3631_v23 = vcombine.low %v364_v7, %v368_v8  ;;  %v420_v7 = vld [vmem:[%s4677_s16 + $0x1c8] sm:$0xff] }
  0xd3   : > { %v571_v21 = vld [vmem:[%s4677_s16 + $0x680] sm:$0xff]  ;;  %v3710_v25 = vcombine.high %v443_v19, %v447_v20  ;;  %2726 = vmatprep.subr.bf16.mxu1 %v3830_v18  ;;  %v3709_v31 = vcombine.low %v443_v19, %v447_v20  ;;  %v372_v18 = vld [vmem:[%s4677_s16 + $0x48] sm:$0xff] }
  0xd4   : > { %v575_v22 = vld [vmem:[%s4677_s16 + $0x6a0] sm:$0xff]  ;;  %2727 = vmatpush1.bf16.msra.mxu1 %v3829_v24  ;;  %v376_v19 = vld [vmem:[%s4677_s16 + $0x68] sm:$0xff] }
  0xd5   : > { %v3838_v26 = vcombine.high %v571_v21, %v575_v22  ;;  %v451_v27 = vld [vmem:[%s4677_s16 + $0x2c0] sm:$0xff]  ;;  %2687 = vmatprep.subr.bf16.mxu0 %v3710_v25  ;;  %v3837_v32 = vcombine.low %v571_v21, %v575_v22  ;;  %v348_v20 = vld [vmem:[%s4670_s30 + $0x28] sm:$0xff]  ;;  %v3640_v25 = vcombine.high %v372_v18, %v376_v19 }
  0xd6   : > { %v455_v28 = vld [vmem:[%s4677_s16 + $0x2e0] sm:$0xff]  ;;  %2688 = vmatpush1.bf16.msra.mxu0 %v3709_v31  ;;  %v424_v8 = vld [vmem:[%s4677_s16 + $0x1e8] sm:$0xff] }
  0xd7   : > { %v579_v29 = vld [vmem:[%s4677_s16 + $0x6c0] sm:$0xff]  ;;  %v3718_v33 = vcombine.high %v451_v27, %v455_v28  ;;  %2728 = vmatprep.subr.bf16.mxu1 %v3838_v26  ;;  %v3717_v39 = vcombine.low %v451_v27, %v455_v28  ;;  %v4781_v28 = vpack.c.bf16 %v348_v20, %v348_v20 }
  0xd8   : > { %v583_v30 = vld [vmem:[%s4677_s16 + $0x6e0] sm:$0xff]  ;;  %2729 = vmatpush1.bf16.msra.mxu1 %v3837_v32  ;;  %v3639_v32 = vcombine.low %v372_v18, %v376_v19  ;;  %v3687_v19 = vcombine.low %v420_v7, %v424_v8 }
  0xd9   : > { %v3846_v34 = vcombine.high %v579_v29, %v583_v30  ;;  %v459_v35 = vld [vmem:[%s4677_s16 + $0x300] sm:$0xff]  ;;  %2689 = vmatprep.subr.bf16.mxu0 %v3718_v33  ;;  %v3845_v40 = vcombine.low %v579_v29, %v583_v30  ;;  %v380_v29 = vld [vmem:[%s4677_s16 + $0x88] sm:$0xff] }
  0xda   : > { %v463_v36 = vld [vmem:[%s4677_s16 + $0x320] sm:$0xff]  ;;  %2690 = vmatpush1.bf16.msra.mxu0 %v3717_v39  ;;  %v384_v30 = vld [vmem:[%s4677_s16 + $0xa8] sm:$0xff] }
  0xdb   : > { %v587_v37 = vld [vmem:[%s4677_s16 + $0x700] sm:$0xff]  ;;  %v3726_v41 = vcombine.high %v459_v35, %v463_v36  ;;  %2730 = vmatprep.subr.bf16.mxu1 %v3846_v34  ;;  %v3725_v47 = vcombine.low %v459_v35, %v463_v36  ;;  %v3648_v34 = vcombine.high %v380_v29, %v384_v30 }
  0xdc   : > { %v591_v38 = vld [vmem:[%s4677_s16 + $0x720] sm:$0xff]  ;;  %2731 = vmatpush1.bf16.msra.mxu1 %v3845_v40  ;;  %v3647_v40 = vcombine.low %v380_v29, %v384_v30 }
  0xdd   : > { %v3854_v42 = vcombine.high %v587_v37, %v591_v38  ;;  %v467_v43 = vld [vmem:[%s4677_s16 + $0x340] sm:$0xff]  ;;  %2691 = vmatprep.subr.bf16.mxu0 %v3726_v41  ;;  %v3853_v48 = vcombine.low %v587_v37, %v591_v38  ;;  %v388_v37 = vld [vmem:[%s4677_s16 + $0xc8] sm:$0xff] }
  0xde   : > { %v471_v44 = vld [vmem:[%s4677_s16 + $0x360] sm:$0xff]  ;;  %2692 = vmatpush1.bf16.msra.mxu0 %v3725_v47  ;;  %v392_v38 = vld [vmem:[%s4677_s16 + $0xe8] sm:$0xff] }
  0xdf   : > { %v595_v45 = vld [vmem:[%s4677_s16 + $0x740] sm:$0xff]  ;;  %v3734_v49 = vcombine.high %v467_v43, %v471_v44  ;;  %2732 = vmatprep.subr.bf16.mxu1 %v3854_v42  ;;  %v3733_v55 = vcombine.low %v467_v43, %v471_v44  ;;  %v3656_v42 = vcombine.high %v388_v37, %v392_v38 }
  0xe0   : > { %v599_v46 = vld [vmem:[%s4677_s16 + $0x760] sm:$0xff]  ;;  %2733 = vmatpush1.bf16.msra.mxu1 %v3853_v48  ;;  %v3655_v48 = vcombine.low %v388_v37, %v392_v38 }
  0xe1   : > { %v3862_v50 = vcombine.high %v595_v45, %v599_v46  ;;  %v475_v51 = vld [vmem:[%s4677_s16 + $0x380] sm:$0xff]  ;;  %2693 = vmatprep.subr.bf16.mxu0 %v3734_v49  ;;  %v3861_v56 = vcombine.low %v595_v45, %v599_v46  ;;  %v396_v45 = vld [vmem:[%s4677_s16 + $0x108] sm:$0xff] }
  0xe2   : > { %v479_v52 = vld [vmem:[%s4677_s16 + $0x3a0] sm:$0xff]  ;;  %2694 = vmatpush1.bf16.msra.mxu0 %v3733_v55  ;;  %v400_v46 = vld [vmem:[%s4677_s16 + $0x128] sm:$0xff] }
  0xe3   : > { %v603_v53 = vld [vmem:[%s4677_s16 + $0x780] sm:$0xff]  ;;  %v3742_v57 = vcombine.high %v475_v51, %v479_v52  ;;  %2734 = vmatprep.subr.bf16.mxu1 %v3862_v50  ;;  %v3741_v1 = vcombine.low %v475_v51, %v479_v52  ;;  %v3664_v50 = vcombine.high %v396_v45, %v400_v46 }
  0xe4   : > { %v607_v54 = vld [vmem:[%s4677_s16 + $0x7a0] sm:$0xff]  ;;  %2735 = vmatpush1.bf16.msra.mxu1 %v3861_v56  ;;  %v3663_v56 = vcombine.low %v396_v45, %v400_v46 }
  0xe5   : > { %v3870_v58 = vcombine.high %v603_v53, %v607_v54  ;;  %v483_v61 = vld [vmem:[%s4677_s16 + $0x3c0] sm:$0xff]  ;;  %2695 = vmatprep.subr.bf16.mxu0 %v3742_v57  ;;  %v3869_v2 = vcombine.low %v603_v53, %v607_v54  ;;  %v404_v53 = vld [vmem:[%s4677_s16 + $0x148] sm:$0xff] }
  0xe6   : > { %v487_v62 = vld [vmem:[%s4677_s16 + $0x3e0] sm:$0xff]  ;;  %2696 = vmatpush1.bf16.msra.mxu0 %v3741_v1  ;;  %v408_v54 = vld [vmem:[%s4677_s16 + $0x168] sm:$0xff] }
  0xe7   : > { %v611_v63 = vld [vmem:[%s4677_s16 + $0x7c0] sm:$0xff]  ;;  %v3750_v3 = vcombine.high %v483_v61, %v487_v62  ;;  %2736 = vmatprep.subr.bf16.mxu1 %v3870_v58  ;;  %v3749_v9 = vcombine.low %v483_v61, %v487_v62  ;;  %v3672_v58 = vcombine.high %v404_v53, %v408_v54 }
  0xe8   : > { %v615_v0 = vld [vmem:[%s4677_s16 + $0x7e0] sm:$0xff]  ;;  %2737 = vmatpush1.bf16.msra.mxu1 %v3869_v2  ;;  %v3671_v2 = vcombine.low %v404_v53, %v408_v54 }
  0xe9   : > { %v3878_v4 = vcombine.high %v611_v63, %v615_v0  ;;  %v619_v5 = vld [vmem:[%s4677_s16 + $0x800] sm:$0xff]  ;;  %2697 = vmatprep.subr.bf16.mxu0 %v3750_v3  ;;  %v3877_v11 = vcombine.low %v611_v63, %v615_v0  ;;  %v412_v63 = vld [vmem:[%s4677_s16 + $0x188] sm:$0xff] }
  0xea   : > { %v623_v6 = vld [vmem:[%s4677_s16 + $0x820] sm:$0xff]  ;;  %2698 = vmatpush1.bf16.msra.mxu0 %v3749_v9  ;;  %v416_v0 = vld [vmem:[%s4677_s16 + $0x1a8] sm:$0xff] }
  0xeb   : > { %v343_v10 = vld [vmem:[%s4670_s30] sm:$0xff]  ;;  %v345_v12 = vld [vmem:[%s4670_s30 + $0x10] sm:$0xff]  ;;  %v3886_v13 = vcombine.high %v619_v5, %v623_v6  ;;  %2738 = vmatprep.subr.bf16.mxu1 %v3878_v4  ;;  %v3885_v22 = vcombine.low %v619_v5, %v623_v6  ;;  %v3680_v4 = vcombine.high %v412_v63, %v416_v0 }
  0xec   : > { %v627_v15 = vld [vmem:[%s4677_s16 + $0x840] sm:$0xff]  ;;  %v4772_v17 = vpack.c.bf16 %v343_v10, %v343_v10  ;;  %v4777_v21 = vpack.c.bf16 %v345_v12, %v345_v12  ;;  %2739 = vmatpush1.bf16.msra.mxu1 %v3877_v11  ;;  %v3679_v10 = vcombine.low %v412_v63, %v416_v0  ;;  %v3688_v12 = vcombine.high %v420_v7, %v424_v8 }
  0xed   : > { %v631_v16 = vld [vmem:[%s4677_s16 + $0x860] sm:$0xff]  ;;  %2749 = vmatprep.subr.bf16.mxu0 %v3886_v13  ;;  %2790 = vmatprep.subr.bf16.mxu1 %v3632_v14 }
  0xee   : > { %v3894_v24 = vcombine.high %v627_v15, %v631_v16  ;;  %v635_v26 = vld [vmem:[%s4677_s16 + $0x880] sm:$0xff]  ;;  %2700 = vmatmul.mubr.bf16.vlgmr.msra.gmra.mrb[0].mxu0 %v4772_v17  ;;  %v3893_v31 = vcombine.low %v627_v15, %v631_v16  ;;  %v428_v15 = vld [vmem:[%s4677_s16 + $0x208] sm:$0xff] }
  0xef   : > { %v639_v27 = vld [vmem:[%s4677_s16 + $0x8a0] sm:$0xff]  ;;  %2741 = vmatmul.mubr.bf16.vlgmr.msra.gmra.mrb[0].mxu1 %v4777_v21  ;;  %2750 = vmatpush1.bf16.msra.mxu0 %v3885_v22  ;;  %v432_v16 = vld [vmem:[%s4677_s16 + $0x228] sm:$0xff] }
  0xf0   : > { %2791 = vmatpush1.bf16.msra.mxu1 %v3631_v23  ;;  %2751 = vmatprep.subr.bf16.mxu0 %v3894_v24  ;;  %v3902_v33 = vcombine.high %v635_v26, %v639_v27  ;;  %v643_v35 = vld [vmem:[%s4677_s16 + $0x8c0] sm:$0xff]  ;;  %v3901_v39 = vcombine.low %v635_v26, %v639_v27  ;;  %v3696_v22 = vcombine.high %v428_v15, %v432_v16  ;;  %v440_v26 = vld [vmem:[%s4677_s16 + $0x268] sm:$0xff] }
  0xf1   : > { %2792 = vmatprep.subr.bf16.mxu1 %v3640_v25  ;;  %v647_v36 = vld [vmem:[%s4677_s16 + $0x8e0] sm:$0xff]  ;;  %2781 = vmatprep.mubr.bf16.mxu0 %v4781_v28  ;;  %v436_v25 = vld [vmem:[%s4677_s16 + $0x248] sm:$0xff]  ;;  %v3695_v29 = vcombine.low %v428_v15, %v432_v16 }
  0xf2   : > { %2822 = vmatprep.mubr.bf16.mxu1 %v4724_v59  ;;  %v3910_v41 = vcombine.high %v643_v35, %v647_v36  ;;  %v651_v43 = vld [vmem:[%s4677_s16 + $0x900] sm:$0xff]  ;;  %v3909_v47 = vcombine.low %v643_v35, %v647_v36  ;;  %v448_v35 = vld [vmem:[%s4677_s16 + $0x2a8] sm:$0xff]  ;;  %v3703_v37 = vcombine.low %v436_v25, %v440_v26 }
  0xf3   : > { %2752 = vmatpush1.bf16.msra.mxu0 %v3893_v31  ;;  %v655_v44 = vld [vmem:[%s4677_s16 + $0x920] sm:$0xff]  ;;  %v3704_v31 = vcombine.high %v436_v25, %v440_v26 }
  0xf4   : > { %2793 = vmatpush1.bf16.msra.mxu1 %v3639_v32  ;;  %2753 = vmatprep.subr.bf16.mxu0 %v3902_v33  ;;  %v3918_v49 = vcombine.high %v651_v43, %v655_v44  ;;  %v659_v51 = vld [vmem:[%s4677_s16 + $0x940] sm:$0xff]  ;;  %v3917_v55 = vcombine.low %v651_v43, %v655_v44  ;;  %v456_v43 = vld [vmem:[%s4677_s16 + $0x2e8] sm:$0xff] }
  0xf5   : > { %2794 = vmatprep.subr.bf16.mxu1 %v3648_v34  ;;  %v663_v52 = vld [vmem:[%s4677_s16 + $0x960] sm:$0xff]  ;;  %v444_v34 = vld [vmem:[%s4677_s16 + $0x288] sm:$0xff] }
  0xf6   : > { %v3926_v57 = vcombine.high %v659_v51, %v663_v52  ;;  %v667_v61 = vld [vmem:[%s4677_s16 + $0x980] sm:$0xff]  ;;  %v3925_v1 = vcombine.low %v659_v51, %v663_v52  ;;  %v3711_v45 = vcombine.low %v444_v34, %v448_v35  ;;  %v464_v51 = vld [vmem:[%s4677_s16 + $0x328] sm:$0xff] }
  0xf7   : > { %2754 = vmatpush1.bf16.msra.mxu0 %v3901_v39  ;;  %v671_v62 = vld [vmem:[%s4677_s16 + $0x9a0] sm:$0xff]  ;;  %v3712_v39 = vcombine.high %v444_v34, %v448_v35  ;;  %v632_v34 = vld [vmem:[%s4677_s16 + $0x868] sm:$0xff] }
  0xf8   : > { %2795 = vmatpush1.bf16.msra.mxu1 %v3647_v40  ;;  %2755 = vmatprep.subr.bf16.mxu0 %v3910_v41  ;;  %v3934_v3 = vcombine.high %v667_v61, %v671_v62  ;;  %v675_v5 = vld [vmem:[%s4677_s16 + $0x9c0] sm:$0xff]  ;;  %v3933_v9 = vcombine.low %v667_v61, %v671_v62  ;;  %v472_v61 = vld [vmem:[%s4677_s16 + $0x368] sm:$0xff] }
  0xf9   : > { %2796 = vmatprep.subr.bf16.mxu1 %v3656_v42  ;;  %v679_v6 = vld [vmem:[%s4677_s16 + $0x9e0] sm:$0xff]  ;;  %v452_v42 = vld [vmem:[%s4677_s16 + $0x2c8] sm:$0xff] }
  0xfa   : > { %v3942_v11 = vcombine.high %v675_v5, %v679_v6  ;;  %v683_v13 = vld [vmem:[%s4677_s16 + $0xa00] sm:$0xff]  ;;  %v3941_v18 = vcombine.low %v675_v5, %v679_v6  ;;  %v3719_v53 = vcombine.low %v452_v42, %v456_v43  ;;  %v480_v5 = vld [vmem:[%s4677_s16 + $0x3a8] sm:$0xff] }
  0xfb   : > { %2756 = vmatpush1.bf16.msra.mxu0 %v3909_v47  ;;  %v687_v14 = vld [vmem:[%s4677_s16 + $0xa20] sm:$0xff]  ;;  %v3720_v47 = vcombine.high %v452_v42, %v456_v43  ;;  %v640_v42 = vld [vmem:[%s4677_s16 + $0x8a8] sm:$0xff] }
  0xfc   : > { %2797 = vmatpush1.bf16.msra.mxu1 %v3655_v48  ;;  %2757 = vmatprep.subr.bf16.mxu0 %v3918_v49  ;;  %v3950_v20 = vcombine.high %v683_v13, %v687_v14  ;;  %v691_v23 = vld [vmem:[%s4677_s16 + $0xa40] sm:$0xff]  ;;  %v3949_v27 = vcombine.low %v683_v13, %v687_v14  ;;  %v488_v13 = vld [vmem:[%s4677_s16 + $0x3e8] sm:$0xff] }
  0xfd   : > { %2798 = vmatprep.subr.bf16.mxu1 %v3664_v50  ;;  %v695_v24 = vld [vmem:[%s4677_s16 + $0xa60] sm:$0xff]  ;;  %v460_v50 = vld [vmem:[%s4677_s16 + $0x308] sm:$0xff] }
  0xfe   : > { %v3958_v30 = vcombine.high %v691_v23, %v695_v24  ;;  %v699_v32 = vld [vmem:[%s4677_s16 + $0xa80] sm:$0xff]  ;;  %v3957_v36 = vcombine.low %v691_v23, %v695_v24  ;;  %v3727_v63 = vcombine.low %v460_v50, %v464_v51  ;;  %v624_v23 = vld [vmem:[%s4677_s16 + $0x828] sm:$0xff] }
  0xff   : > { %2758 = vmatpush1.bf16.msra.mxu0 %v3917_v55  ;;  %v703_v33 = vld [vmem:[%s4677_s16 + $0xaa0] sm:$0xff]  ;;  %v3728_v55 = vcombine.high %v460_v50, %v464_v51  ;;  %v648_v50 = vld [vmem:[%s4677_s16 + $0x8e8] sm:$0xff] }
 0x100   : > { %2799 = vmatpush1.bf16.msra.mxu1 %v3663_v56  ;;  %2759 = vmatprep.subr.bf16.mxu0 %v3926_v57  ;;  %v3966_v38 = vcombine.high %v699_v32, %v703_v33  ;;  %v707_v40 = vld [vmem:[%s4677_s16 + $0xac0] sm:$0xff]  ;;  %v3965_v44 = vcombine.low %v699_v32, %v703_v33  ;;  %v628_v33 = vld [vmem:[%s4677_s16 + $0x848] sm:$0xff] }
 0x101   : > { %2800 = vmatprep.subr.bf16.mxu1 %v3672_v58  ;;  %v711_v41 = vld [vmem:[%s4677_s16 + $0xae0] sm:$0xff]  ;;  %v468_v58 = vld [vmem:[%s4677_s16 + $0x348] sm:$0xff] }
 0x102   : > { %v3974_v46 = vcombine.high %v707_v40, %v711_v41  ;;  %v715_v48 = vld [vmem:[%s4677_s16 + $0xb00] sm:$0xff]  ;;  %v3973_v52 = vcombine.low %v707_v40, %v711_v41  ;;  %v3735_v7 = vcombine.low %v468_v58, %v472_v61  ;;  %v512_v40 = vld [vmem:[%s4677_s16 + $0x4a8] sm:$0xff] }
 0x103   : > { %2760 = vmatpush1.bf16.msra.mxu0 %v3925_v1  ;;  %v719_v49 = vld [vmem:[%s4677_s16 + $0xb20] sm:$0xff]  ;;  %v3736_v1 = vcombine.high %v468_v58, %v472_v61  ;;  %v636_v41 = vld [vmem:[%s4677_s16 + $0x888] sm:$0xff] }
 0x104   : > { %2801 = vmatpush1.bf16.msra.mxu1 %v3671_v2  ;;  %2761 = vmatprep.subr.bf16.mxu0 %v3934_v3  ;;  %v3982_v54 = vcombine.high %v715_v48, %v719_v49  ;;  %v723_v56 = vld [vmem:[%s4677_s16 + $0xb40] sm:$0xff]  ;;  %v3981_v62 = vcombine.low %v715_v48, %v719_v49  ;;  %v520_v48 = vld [vmem:[%s4677_s16 + $0x4e8] sm:$0xff] }
 0x105   : > { %2802 = vmatprep.subr.bf16.mxu1 %v3680_v4  ;;  %v727_v57 = vld [vmem:[%s4677_s16 + $0xb60] sm:$0xff]  ;;  %v476_v4 = vld [vmem:[%s4677_s16 + $0x388] sm:$0xff] }
 0x106   : > { %v3990_v0 = vcombine.high %v723_v56, %v727_v57  ;;  %v731_v2 = vld [vmem:[%s4677_s16 + $0xb80] sm:$0xff]  ;;  %v3989_v6 = vcombine.low %v723_v56, %v727_v57  ;;  %v3743_v15 = vcombine.low %v476_v4, %v480_v5  ;;  %v644_v49 = vld [vmem:[%s4677_s16 + $0x8c8] sm:$0xff] }
 0x107   : > { %2762 = vmatpush1.bf16.msra.mxu0 %v3933_v9  ;;  %v735_v3 = vld [vmem:[%s4677_s16 + $0xba0] sm:$0xff]  ;;  %v3744_v9 = vcombine.high %v476_v4, %v480_v5  ;;  %v528_v56 = vld [vmem:[%s4677_s16 + $0x528] sm:$0xff] }
 0x108   : > { %2803 = vmatpush1.bf16.msra.mxu1 %v3679_v10  ;;  %2763 = vmatprep.subr.bf16.mxu0 %v3942_v11  ;;  %v3998_v8 = vcombine.high %v731_v2, %v735_v3  ;;  %v739_v10 = vld [vmem:[%s4677_s16 + $0xbc0] sm:$0xff]  ;;  %v3997_v14 = vcombine.low %v731_v2, %v735_v3  ;;  %v652_v57 = vld [vmem:[%s4677_s16 + $0x908] sm:$0xff] }
 0x109   : > { %2804 = vmatprep.subr.bf16.mxu1 %v3688_v12  ;;  %v743_v11 = vld [vmem:[%s4677_s16 + $0xbe0] sm:$0xff]  ;;  %v484_v12 = vld [vmem:[%s4677_s16 + $0x3c8] sm:$0xff] }
 0x10a   : > { %v4006_v16 = vcombine.high %v739_v10, %v743_v11  ;;  %v4005_v24 = vcombine.low %v739_v10, %v743_v11  ;;  %v347_v25 = vld [vmem:[%s4670_s30 + $0x20] sm:$0xff]  ;;  %v3751_v26 = vcombine.low %v484_v12, %v488_v13  ;;  %v656_v58 = vld [vmem:[%s4677_s16 + $0x928] sm:$0xff] }
 0x10b   : > { %2764 = vmatpush1.bf16.msra.mxu0 %v3941_v18  ;;  %v3752_v18 = vcombine.high %v484_v12, %v488_v13  ;;  %v4848_v32 = vpack.c.bf16 %v347_v25, %v347_v25  ;;  %v536_v2 = vld [vmem:[%s4677_s16 + $0x568] sm:$0xff] }
 0x10c   : > { %2805 = vmatpush1.bf16.msra.mxu1 %v3687_v19  ;;  %2765 = vmatprep.subr.bf16.mxu0 %v3950_v20  ;;  %v492_v19 = vld [vmem:[%s4677_s16 + $0x408] sm:$0xff] }
 0x10d   : > { %2806 = vmatprep.subr.bf16.mxu1 %v3696_v22  ;;  %v496_v20 = vld [vmem:[%s4677_s16 + $0x428] sm:$0xff] }
 0x10e   : > { %v620_v22 = vld [vmem:[%s4677_s16 + $0x808] sm:$0xff]  ;;  %v3759_v35 = vcombine.low %v492_v19, %v496_v20 }
 0x10f   : > { %2766 = vmatpush1.bf16.msra.mxu0 %v3949_v27  ;;  %v3760_v27 = vcombine.high %v492_v19, %v496_v20  ;;  %v660_v3 = vld [vmem:[%s4677_s16 + $0x948] sm:$0xff] }
 0x110   : > { %2807 = vmatpush1.bf16.msra.mxu1 %v3695_v29  ;;  %2767 = vmatprep.subr.bf16.mxu0 %v3958_v30  ;;  %v3888_v29 = vcombine.high %v620_v22, %v624_v23  ;;  %v500_v30 = vld [vmem:[%s4677_s16 + $0x448] sm:$0xff] }
 0x111   : > { %2808 = vmatprep.subr.bf16.mxu1 %v3704_v31  ;;  %v504_v31 = vld [vmem:[%s4677_s16 + $0x468] sm:$0xff] }
 0x112   : > { %v3767_v43 = vcombine.low %v500_v30, %v504_v31  ;;  %v664_v4 = vld [vmem:[%s4677_s16 + $0x968] sm:$0xff] }
 0x113   : > { %2768 = vmatpush1.bf16.msra.mxu0 %v3957_v36  ;;  %v3887_v36 = vcombine.low %v620_v22, %v624_v23  ;;  %v544_v10 = vld [vmem:[%s4677_s16 + $0x5a8] sm:$0xff] }
 0x114   : > { %2809 = vmatpush1.bf16.msra.mxu1 %v3703_v37  ;;  %2769 = vmatprep.subr.bf16.mxu0 %v3966_v38  ;;  %v3768_v37 = vcombine.high %v500_v30, %v504_v31  ;;  %v3896_v38 = vcombine.high %v628_v33, %v632_v34  ;;  %v668_v11 = vld [vmem:[%s4677_s16 + $0x988] sm:$0xff] }
 0x115   : > { %2810 = vmatprep.subr.bf16.mxu1 %v3712_v39  ;;  %v508_v39 = vld [vmem:[%s4677_s16 + $0x488] sm:$0xff] }
 0x116   : > { %v3775_v51 = vcombine.low %v508_v39, %v512_v40  ;;  %v672_v12 = vld [vmem:[%s4677_s16 + $0x9a8] sm:$0xff] }
 0x117   : > { %2770 = vmatpush1.bf16.msra.mxu0 %v3965_v44  ;;  %v3895_v44 = vcombine.low %v628_v33, %v632_v34  ;;  %v552_v19 = vld [vmem:[%s4677_s16 + $0x5e8] sm:$0xff] }
 0x118   : > { %2811 = vmatpush1.bf16.msra.mxu1 %v3711_v45  ;;  %2771 = vmatprep.subr.bf16.mxu0 %v3974_v46  ;;  %v3776_v45 = vcombine.high %v508_v39, %v512_v40  ;;  %v3904_v46 = vcombine.high %v636_v41, %v640_v42  ;;  %v676_v20 = vld [vmem:[%s4677_s16 + $0x9c8] sm:$0xff] }
 0x119   : > { %2812 = vmatprep.subr.bf16.mxu1 %v3720_v47  ;;  %v516_v47 = vld [vmem:[%s4677_s16 + $0x4c8] sm:$0xff] }
 0x11a   : > { %v3783_v61 = vcombine.low %v516_v47, %v520_v48  ;;  %v680_v22 = vld [vmem:[%s4677_s16 + $0x9e8] sm:$0xff] }
 0x11b   : > { %2772 = vmatpush1.bf16.msra.mxu0 %v3973_v52  ;;  %v3903_v52 = vcombine.low %v636_v41, %v640_v42  ;;  %v684_v30 = vld [vmem:[%s4677_s16 + $0xa08] sm:$0xff]  ;;  %v3943_v34 = vcombine.low %v676_v20, %v680_v22 }
 0x11c   : > { %2813 = vmatpush1.bf16.msra.mxu1 %v3719_v53  ;;  %2773 = vmatprep.subr.bf16.mxu0 %v3982_v54  ;;  %v3784_v53 = vcombine.high %v516_v47, %v520_v48  ;;  %v3912_v54 = vcombine.high %v644_v49, %v648_v50  ;;  %v688_v31 = vld [vmem:[%s4677_s16 + $0xa28] sm:$0xff] }
 0x11d   : > { %2814 = vmatprep.subr.bf16.mxu1 %v3728_v55  ;;  %v524_v55 = vld [vmem:[%s4677_s16 + $0x508] sm:$0xff]  ;;  %v3951_v42 = vcombine.low %v684_v30, %v688_v31 }
 0x11e   : > { %v3791_v5 = vcombine.low %v524_v55, %v528_v56  ;;  %v692_v39 = vld [vmem:[%s4677_s16 + $0xa48] sm:$0xff] }
 0x11f   : > { %2774 = vmatpush1.bf16.msra.mxu0 %v3981_v62  ;;  %v3911_v62 = vcombine.low %v644_v49, %v648_v50  ;;  %v696_v40 = vld [vmem:[%s4677_s16 + $0xa68] sm:$0xff] }
 0x120   : > { %2815 = vmatpush1.bf16.msra.mxu1 %v3727_v63  ;;  %2775 = vmatprep.subr.bf16.mxu0 %v3990_v0  ;;  %v3792_v63 = vcombine.high %v524_v55, %v528_v56  ;;  %v3920_v0 = vcombine.high %v652_v57, %v656_v58  ;;  %v700_v47 = vld [vmem:[%s4677_s16 + $0xa88] sm:$0xff]  ;;  %v3959_v50 = vcombine.low %v692_v39, %v696_v40 }
 0x121   : > { %2816 = vmatprep.subr.bf16.mxu1 %v3736_v1  ;;  %v532_v1 = vld [vmem:[%s4677_s16 + $0x548] sm:$0xff] }
 0x122   : > { %v3799_v13 = vcombine.low %v532_v1, %v536_v2  ;;  %v704_v48 = vld [vmem:[%s4677_s16 + $0xaa8] sm:$0xff] }
 0x123   : > { %2776 = vmatpush1.bf16.msra.mxu0 %v3989_v6  ;;  %v3919_v6 = vcombine.low %v652_v57, %v656_v58  ;;  %v708_v55 = vld [vmem:[%s4677_s16 + $0xac8] sm:$0xff]  ;;  %v3967_v58 = vcombine.low %v700_v47, %v704_v48 }
 0x124   : > { %2817 = vmatpush1.bf16.msra.mxu1 %v3735_v7  ;;  %2777 = vmatprep.subr.bf16.mxu0 %v3998_v8  ;;  %v3800_v7 = vcombine.high %v532_v1, %v536_v2  ;;  %v3928_v8 = vcombine.high %v660_v3, %v664_v4  ;;  %v712_v56 = vld [vmem:[%s4677_s16 + $0xae8] sm:$0xff] }
 0x125   : > { %2818 = vmatprep.subr.bf16.mxu1 %v3744_v9  ;;  %v540_v9 = vld [vmem:[%s4677_s16 + $0x588] sm:$0xff] }
 0x126   : > { %v3807_v23 = vcombine.low %v540_v9, %v544_v10  ;;  %v716_v1 = vld [vmem:[%s4677_s16 + $0xb08] sm:$0xff] }
 0x127   : > { %2778 = vmatpush1.bf16.msra.mxu0 %v3997_v14  ;;  %v3927_v14 = vcombine.low %v660_v3, %v664_v4  ;;  %v720_v2 = vld [vmem:[%s4677_s16 + $0xb28] sm:$0xff]  ;;  %v3975_v4 = vcombine.low %v708_v55, %v712_v56 }
 0x128   : > { %2819 = vmatpush1.bf16.msra.mxu1 %v3743_v15  ;;  %2779 = vmatprep.subr.bf16.mxu0 %v4006_v16  ;;  %v3808_v15 = vcombine.high %v540_v9, %v544_v10  ;;  %v3936_v16 = vcombine.high %v668_v11, %v672_v12  ;;  %v724_v9 = vld [vmem:[%s4677_s16 + $0xb48] sm:$0xff] }
 0x129   : > { %2820 = vmatprep.subr.bf16.mxu1 %v3752_v18  ;;  %v548_v18 = vld [vmem:[%s4677_s16 + $0x5c8] sm:$0xff] }
 0x12a   : > { %v3816_v25 = vcombine.high %v548_v18, %v552_v19  ;;  %v3815_v33 = vcombine.low %v548_v18, %v552_v19  ;;  %v728_v10 = vld [vmem:[%s4677_s16 + $0xb68] sm:$0xff] }
 0x12b   : > { %2780 = vmatpush1.bf16.msra.mxu0 %v4005_v24  ;;  %v3935_v24 = vcombine.low %v668_v11, %v672_v12  ;;  %v3983_v12 = vcombine.low %v716_v1, %v720_v2  ;;  %v732_v18 = vld [vmem:[%s4677_s16 + $0xb88] sm:$0xff] }
 0x12c   : > { %2821 = vmatpush1.bf16.msra.mxu1 %v3751_v26  ;;  %2831 = vmatprep.subr.bf16.mxu0 %v3760_v27  ;;  %v3944_v26 = vcombine.high %v676_v20, %v680_v22  ;;  %v556_v27 = vld [vmem:[%s4677_s16 + $0x608] sm:$0xff]  ;;  %v3991_v22 = vcombine.low %v724_v9, %v728_v10 }
 0x12d   : > { %2872 = vmatprep.subr.bf16.mxu1 %v3888_v29  ;;  %v560_v29 = vld [vmem:[%s4677_s16 + $0x628] sm:$0xff] }
 0x12e   : > { %2782 = vmatmul.mubr.bf16.vlgmr.msra.gmra.mrb[4].mxu0 %v4848_v32  ;;  %v3823_v41 = vcombine.low %v556_v27, %v560_v29  ;;  %v736_v19 = vld [vmem:[%s4677_s16 + $0xba8] sm:$0xff] }
 0x12f   : > { %2823 = vmatmul.mubr.bf16.vlgmr.msra.gmra.mrb[4].mxu1 %v4772_v17  ;;  %2832 = vmatpush1.bf16.msra.mxu0 %v3759_v35  ;;  %v3824_v35 = vcombine.high %v556_v27, %v560_v29  ;;  %v740_v27 = vld [vmem:[%s4677_s16 + $0xbc8] sm:$0xff] }
 0x130   : > { %2873 = vmatpush1.bf16.msra.mxu1 %v3887_v36  ;;  %2833 = vmatprep.subr.bf16.mxu0 %v3768_v37  ;;  %v3952_v36 = vcombine.high %v684_v30, %v688_v31  ;;  %v564_v37 = vld [vmem:[%s4677_s16 + $0x648] sm:$0xff]  ;;  %v3999_v31 = vcombine.low %v732_v18, %v736_v19 }
 0x131   : > { %2874 = vmatprep.subr.bf16.mxu1 %v3896_v38  ;;  %2863 = vmatprep.mubr.bf16.mxu0 %v4726_v60  ;;  %v568_v38 = vld [vmem:[%s4677_s16 + $0x668] sm:$0xff] }
 0x132   : > { %2904 = vmatprep.mubr.bf16.mxu1 %v4781_v28  ;;  %v3831_v49 = vcombine.low %v564_v37, %v568_v38  ;;  %v744_v29 = vld [vmem:[%s4677_s16 + $0xbe8] sm:$0xff] }
 0x133   : > { %2834 = vmatpush1.bf16.msra.mxu0 %v3767_v43  ;;  %v3832_v43 = vcombine.high %v564_v37, %v568_v38  ;;  %v493_v37 = vld [vmem:[%s4677_s16 + $0x410] sm:$0xff] }
 0x134   : > { %2875 = vmatpush1.bf16.msra.mxu1 %v3895_v44  ;;  %2835 = vmatprep.subr.bf16.mxu0 %v3776_v45  ;;  %v3960_v44 = vcombine.high %v692_v39, %v696_v40  ;;  %v572_v45 = vld [vmem:[%s4677_s16 + $0x688] sm:$0xff]  ;;  %v497_v38 = vld [vmem:[%s4677_s16 + $0x430] sm:$0xff]  ;;  %v4007_v40 = vcombine.low %v740_v27, %v744_v29 }
 0x135   : > { %2876 = vmatprep.subr.bf16.mxu1 %v3904_v46  ;;  %v576_v46 = vld [vmem:[%s4677_s16 + $0x6a8] sm:$0xff] }
 0x136   : > { %v3839_v57 = vcombine.low %v572_v45, %v576_v46 }
 0x137   : > { %2836 = vmatpush1.bf16.msra.mxu0 %v3775_v51  ;;  %v3840_v51 = vcombine.high %v572_v45, %v576_v46  ;;  %v501_v45 = vld [vmem:[%s4677_s16 + $0x450] sm:$0xff] }
 0x138   : > { %2877 = vmatpush1.bf16.msra.mxu1 %v3903_v52  ;;  %2837 = vmatprep.subr.bf16.mxu0 %v3784_v53  ;;  %v3968_v52 = vcombine.high %v700_v47, %v704_v48  ;;  %v580_v53 = vld [vmem:[%s4677_s16 + $0x6c8] sm:$0xff]  ;;  %v505_v46 = vld [vmem:[%s4677_s16 + $0x470] sm:$0xff]  ;;  %v3761_v48 = vcombine.low %v493_v37, %v497_v38 }
 0x139   : > { %2878 = vmatprep.subr.bf16.mxu1 %v3912_v54  ;;  %v584_v54 = vld [vmem:[%s4677_s16 + $0x6e8] sm:$0xff] }
 0x13a   : > { %v3847_v3 = vcombine.low %v580_v53, %v584_v54 }
 0x13b   : > { %2838 = vmatpush1.bf16.msra.mxu0 %v3783_v61  ;;  %v3848_v61 = vcombine.high %v580_v53, %v584_v54  ;;  %v509_v53 = vld [vmem:[%s4677_s16 + $0x490] sm:$0xff] }
 0x13c   : > { %2879 = vmatpush1.bf16.msra.mxu1 %v3911_v62  ;;  %2839 = vmatprep.subr.bf16.mxu0 %v3792_v63  ;;  %v3976_v62 = vcombine.high %v708_v55, %v712_v56  ;;  %v588_v63 = vld [vmem:[%s4677_s16 + $0x708] sm:$0xff]  ;;  %v513_v54 = vld [vmem:[%s4677_s16 + $0x4b0] sm:$0xff]  ;;  %v3769_v56 = vcombine.low %v501_v45, %v505_v46 }
 0x13d   : > { %2880 = vmatprep.subr.bf16.mxu1 %v3920_v0  ;;  %v592_v0 = vld [vmem:[%s4677_s16 + $0x728] sm:$0xff] }
 0x13e   : > { %v3855_v11 = vcombine.low %v588_v63, %v592_v0 }
 0x13f   : > { %2840 = vmatpush1.bf16.msra.mxu0 %v3791_v5  ;;  %v3856_v5 = vcombine.high %v588_v63, %v592_v0  ;;  %v517_v63 = vld [vmem:[%s4677_s16 + $0x4d0] sm:$0xff] }
 0x140   : > { %2881 = vmatpush1.bf16.msra.mxu1 %v3919_v6  ;;  %2841 = vmatprep.subr.bf16.mxu0 %v3800_v7  ;;  %v3984_v6 = vcombine.high %v716_v1, %v720_v2  ;;  %v596_v7 = vld [vmem:[%s4677_s16 + $0x748] sm:$0xff]  ;;  %v521_v0 = vld [vmem:[%s4677_s16 + $0x4f0] sm:$0xff]  ;;  %v3777_v2 = vcombine.low %v509_v53, %v513_v54 }
 0x141   : > { %2882 = vmatprep.subr.bf16.mxu1 %v3928_v8  ;;  %v600_v8 = vld [vmem:[%s4677_s16 + $0x768] sm:$0xff] }
 0x142   : > { %v3863_v20 = vcombine.low %v596_v7, %v600_v8 }
 0x143   : > { %2842 = vmatpush1.bf16.msra.mxu0 %v3799_v13  ;;  %v3864_v13 = vcombine.high %v596_v7, %v600_v8  ;;  %v525_v7 = vld [vmem:[%s4677_s16 + $0x510] sm:$0xff] }
 0x144   : > { %2883 = vmatpush1.bf16.msra.mxu1 %v3927_v14  ;;  %2843 = vmatprep.subr.bf16.mxu0 %v3808_v15  ;;  %v3992_v14 = vcombine.high %v724_v9, %v728_v10  ;;  %v604_v15 = vld [vmem:[%s4677_s16 + $0x788] sm:$0xff]  ;;  %v529_v8 = vld [vmem:[%s4677_s16 + $0x530] sm:$0xff]  ;;  %v3785_v10 = vcombine.low %v517_v63, %v521_v0 }
 0x145   : > { %2884 = vmatprep.subr.bf16.mxu1 %v3936_v16  ;;  %v608_v16 = vld [vmem:[%s4677_s16 + $0x7a8] sm:$0xff] }
 0x146   : > { %v3871_v30 = vcombine.low %v604_v15, %v608_v16 }
 0x147   : > { %2844 = vmatpush1.bf16.msra.mxu0 %v3807_v23  ;;  %v3872_v23 = vcombine.high %v604_v15, %v608_v16  ;;  %v533_v15 = vld [vmem:[%s4677_s16 + $0x550] sm:$0xff] }
 0x148   : > { %2885 = vmatpush1.bf16.msra.mxu1 %v3935_v24  ;;  %2845 = vmatprep.subr.bf16.mxu0 %v3816_v25  ;;  %v4000_v24 = vcombine.high %v732_v18, %v736_v19  ;;  %v612_v25 = vld [vmem:[%s4677_s16 + $0x7c8] sm:$0xff]  ;;  %v537_v16 = vld [vmem:[%s4677_s16 + $0x570] sm:$0xff]  ;;  %v3793_v19 = vcombine.low %v525_v7, %v529_v8 }
 0x149   : > { %2886 = vmatprep.subr.bf16.mxu1 %v3944_v26  ;;  %v616_v26 = vld [vmem:[%s4677_s16 + $0x7e8] sm:$0xff] }
 0x14a   : > { %v3879_v39 = vcombine.low %v612_v25, %v616_v26 }
 0x14b   : > { %2846 = vmatpush1.bf16.msra.mxu0 %v3815_v33  ;;  %v3880_v33 = vcombine.high %v612_v25, %v616_v26  ;;  %v541_v25 = vld [vmem:[%s4677_s16 + $0x590] sm:$0xff] }
 0x14c   : > { %2887 = vmatpush1.bf16.msra.mxu1 %v3943_v34  ;;  %2847 = vmatprep.subr.bf16.mxu0 %v3824_v35  ;;  %v4008_v34 = vcombine.high %v740_v27, %v744_v29  ;;  %v365_v35 = vld [vmem:[%s4677_s16 + $0x10] sm:$0xff]  ;;  %v3801_v29 = vcombine.low %v533_v15, %v537_v16 }
 0x14d   : > { %2888 = vmatprep.subr.bf16.mxu1 %v3952_v36  ;;  %v369_v36 = vld [vmem:[%s4677_s16 + $0x30] sm:$0xff] }
 0x14e   : > { %v3633_v47 = vcombine.low %v365_v35, %v369_v36  ;;  %v545_v26 = vld [vmem:[%s4677_s16 + $0x5b0] sm:$0xff] }
 0x14f   : > { %2848 = vmatpush1.bf16.msra.mxu0 %v3823_v41  ;;  %v3634_v41 = vcombine.high %v365_v35, %v369_v36  ;;  %v549_v35 = vld [vmem:[%s4677_s16 + $0x5d0] sm:$0xff] }
 0x150   : > { %2889 = vmatpush1.bf16.msra.mxu1 %v3951_v42  ;;  %2849 = vmatprep.subr.bf16.mxu0 %v3832_v43  ;;  %v3762_v42 = vcombine.high %v493_v37, %v497_v38  ;;  %v373_v43 = vld [vmem:[%s4677_s16 + $0x50] sm:$0xff]  ;;  %v3809_v38 = vcombine.low %v541_v25, %v545_v26 }
 0x151   : > { %2890 = vmatprep.subr.bf16.mxu1 %v3960_v44  ;;  %v377_v44 = vld [vmem:[%s4677_s16 + $0x70] sm:$0xff] }
 0x152   : > { %v3641_v55 = vcombine.low %v373_v43, %v377_v44  ;;  %v553_v36 = vld [vmem:[%s4677_s16 + $0x5f0] sm:$0xff] }
 0x153   : > { %2850 = vmatpush1.bf16.msra.mxu0 %v3831_v49  ;;  %v3642_v49 = vcombine.high %v373_v43, %v377_v44  ;;  %v557_v43 = vld [vmem:[%s4677_s16 + $0x610] sm:$0xff] }
 0x154   : > { %2891 = vmatpush1.bf16.msra.mxu1 %v3959_v50  ;;  %2851 = vmatprep.subr.bf16.mxu0 %v3840_v51  ;;  %v3770_v50 = vcombine.high %v501_v45, %v505_v46  ;;  %v381_v51 = vld [vmem:[%s4677_s16 + $0x90] sm:$0xff]  ;;  %v3817_v46 = vcombine.low %v549_v35, %v553_v36 }
 0x155   : > { %2892 = vmatprep.subr.bf16.mxu1 %v3968_v52  ;;  %v385_v52 = vld [vmem:[%s4677_s16 + $0xb0] sm:$0xff] }
 0x156   : > { %v3649_v1 = vcombine.low %v381_v51, %v385_v52  ;;  %v561_v44 = vld [vmem:[%s4677_s16 + $0x630] sm:$0xff] }
 0x157   : > { %2852 = vmatpush1.bf16.msra.mxu0 %v3839_v57  ;;  %v3650_v57 = vcombine.high %v381_v51, %v385_v52  ;;  %v565_v51 = vld [vmem:[%s4677_s16 + $0x650] sm:$0xff] }
 0x158   : > { %2893 = vmatpush1.bf16.msra.mxu1 %v3967_v58  ;;  %2853 = vmatprep.subr.bf16.mxu0 %v3848_v61  ;;  %v3778_v58 = vcombine.high %v509_v53, %v513_v54  ;;  %v389_v61 = vld [vmem:[%s4677_s16 + $0xd0] sm:$0xff]  ;;  %v3825_v54 = vcombine.low %v557_v43, %v561_v44 }
 0x159   : > { %2894 = vmatprep.subr.bf16.mxu1 %v3976_v62  ;;  %v393_v62 = vld [vmem:[%s4677_s16 + $0xf0] sm:$0xff] }
 0x15a   : > { %v3657_v9 = vcombine.low %v389_v61, %v393_v62  ;;  %v569_v52 = vld [vmem:[%s4677_s16 + $0x670] sm:$0xff] }
 0x15b   : > { %2854 = vmatpush1.bf16.msra.mxu0 %v3847_v3  ;;  %v3658_v3 = vcombine.high %v389_v61, %v393_v62  ;;  %v573_v61 = vld [vmem:[%s4677_s16 + $0x690] sm:$0xff] }
 0x15c   : > { %2895 = vmatpush1.bf16.msra.mxu1 %v3975_v4  ;;  %2855 = vmatprep.subr.bf16.mxu0 %v3856_v5  ;;  %v3786_v4 = vcombine.high %v517_v63, %v521_v0  ;;  %v397_v5 = vld [vmem:[%s4677_s16 + $0x110] sm:$0xff]  ;;  %v3833_v0 = vcombine.low %v565_v51, %v569_v52 }
 0x15d   : > { %2896 = vmatprep.subr.bf16.mxu1 %v3984_v6  ;;  %v401_v6 = vld [vmem:[%s4677_s16 + $0x130] sm:$0xff] }
 0x15e   : > { %v3665_v18 = vcombine.low %v397_v5, %v401_v6  ;;  %v577_v62 = vld [vmem:[%s4677_s16 + $0x6b0] sm:$0xff] }
 0x15f   : > { %2856 = vmatpush1.bf16.msra.mxu0 %v3855_v11  ;;  %v3666_v11 = vcombine.high %v397_v5, %v401_v6  ;;  %v581_v5 = vld [vmem:[%s4677_s16 + $0x6d0] sm:$0xff] }
 0x160   : > { %2897 = vmatpush1.bf16.msra.mxu1 %v3983_v12  ;;  %2857 = vmatprep.subr.bf16.mxu0 %v3864_v13  ;;  %v3794_v12 = vcombine.high %v525_v7, %v529_v8  ;;  %v405_v13 = vld [vmem:[%s4677_s16 + $0x150] sm:$0xff]  ;;  %v3841_v8 = vcombine.low %v573_v61, %v577_v62 }
 0x161   : > { %2898 = vmatprep.subr.bf16.mxu1 %v3992_v14  ;;  %v409_v14 = vld [vmem:[%s4677_s16 + $0x170] sm:$0xff] }
 0x162   : > { %v3673_v27 = vcombine.low %v405_v13, %v409_v14  ;;  %v585_v6 = vld [vmem:[%s4677_s16 + $0x6f0] sm:$0xff] }
 0x163   : > { %2858 = vmatpush1.bf16.msra.mxu0 %v3863_v20  ;;  %v3674_v20 = vcombine.high %v405_v13, %v409_v14  ;;  %v589_v13 = vld [vmem:[%s4677_s16 + $0x710] sm:$0xff] }
 0x164   : > { %2899 = vmatpush1.bf16.msra.mxu1 %v3991_v22  ;;  %2859 = vmatprep.subr.bf16.mxu0 %v3872_v23  ;;  %v3802_v22 = vcombine.high %v533_v15, %v537_v16  ;;  %v413_v23 = vld [vmem:[%s4677_s16 + $0x190] sm:$0xff]  ;;  %v3849_v16 = vcombine.low %v581_v5, %v585_v6 }
 0x165   : > { %2900 = vmatprep.subr.bf16.mxu1 %v4000_v24  ;;  %v417_v24 = vld [vmem:[%s4677_s16 + $0x1b0] sm:$0xff] }
 0x166   : > { %v3681_v37 = vcombine.low %v413_v23, %v417_v24  ;;  %v593_v14 = vld [vmem:[%s4677_s16 + $0x730] sm:$0xff] }
 0x167   : > { %2860 = vmatpush1.bf16.msra.mxu0 %v3871_v30  ;;  %v3682_v30 = vcombine.high %v413_v23, %v417_v24  ;;  %v597_v23 = vld [vmem:[%s4677_s16 + $0x750] sm:$0xff] }
 0x168   : > { %2901 = vmatpush1.bf16.msra.mxu1 %v3999_v31  ;;  %2861 = vmatprep.subr.bf16.mxu0 %v3880_v33  ;;  %v3810_v31 = vcombine.high %v541_v25, %v545_v26  ;;  %v421_v33 = vld [vmem:[%s4677_s16 + $0x1d0] sm:$0xff]  ;;  %v3857_v26 = vcombine.low %v589_v13, %v593_v14 }
 0x169   : > { %2902 = vmatprep.subr.bf16.mxu1 %v4008_v34  ;;  %v425_v34 = vld [vmem:[%s4677_s16 + $0x1f0] sm:$0xff] }
 0x16a   : > { %v3689_v45 = vcombine.low %v421_v33, %v425_v34  ;;  %v601_v24 = vld [vmem:[%s4677_s16 + $0x770] sm:$0xff] }
 0x16b   : > { %2862 = vmatpush1.bf16.msra.mxu0 %v3879_v39  ;;  %v3690_v39 = vcombine.high %v421_v33, %v425_v34  ;;  %v605_v33 = vld [vmem:[%s4677_s16 + $0x790] sm:$0xff] }
 0x16c   : > { %2903 = vmatpush1.bf16.msra.mxu1 %v4007_v40  ;;  %2913 = vmatprep.subr.bf16.mxu0 %v3634_v41  ;;  %v3818_v40 = vcombine.high %v549_v35, %v553_v36  ;;  %v429_v41 = vld [vmem:[%s4677_s16 + $0x210] sm:$0xff]  ;;  %v3865_v36 = vcombine.low %v597_v23, %v601_v24 }
 0x16d   : > { %2954 = vmatprep.subr.bf16.mxu1 %v3762_v42  ;;  %v433_v42 = vld [vmem:[%s4677_s16 + $0x230] sm:$0xff] }
 0x16e   : > { %2864 = vmatmul.mubr.bf16.vlgmr.msra.gmra.mrb[8].mxu0 %v4777_v21  ;;  %v3697_v53 = vcombine.low %v429_v41, %v433_v42  ;;  %v609_v34 = vld [vmem:[%s4677_s16 + $0x7b0] sm:$0xff] }
 0x16f   : > { %2905 = vmatmul.mubr.bf16.vlgmr.msra.gmra.mrb[8].mxu1 %v4848_v32  ;;  %2914 = vmatpush1.bf16.msra.mxu0 %v3633_v47  ;;  %v3698_v47 = vcombine.high %v429_v41, %v433_v42  ;;  %v613_v41 = vld [vmem:[%s4677_s16 + $0x7d0] sm:$0xff] }
 0x170   : > { %2955 = vmatpush1.bf16.msra.mxu1 %v3761_v48  ;;  %2915 = vmatprep.subr.bf16.mxu0 %v3642_v49  ;;  %v3826_v48 = vcombine.high %v557_v43, %v561_v44  ;;  %v437_v49 = vld [vmem:[%s4677_s16 + $0x250] sm:$0xff]  ;;  %v3873_v44 = vcombine.low %v605_v33, %v609_v34 }
 0x171   : > { %2956 = vmatprep.subr.bf16.mxu1 %v3770_v50  ;;  %2945 = vmatprep.mubr.bf16.mxu0 %v4724_v59  ;;  %v441_v50 = vld [vmem:[%s4677_s16 + $0x270] sm:$0xff] }
 0x172   : > { %2986 = vmatprep.mubr.bf16.mxu1 %v4726_v60  ;;  %v3705_v63 = vcombine.low %v437_v49, %v441_v50  ;;  %v617_v42 = vld [vmem:[%s4677_s16 + $0x7f0] sm:$0xff] }
 0x173   : > { %2916 = vmatpush1.bf16.msra.mxu0 %v3641_v55  ;;  %v3706_v55 = vcombine.high %v437_v49, %v441_v50  ;;  %v366_v49 = vld [vmem:[%s4677_s16 + $0x18] sm:$0xff] }
 0x174   : > { %2957 = vmatpush1.bf16.msra.mxu1 %v3769_v56  ;;  %2917 = vmatprep.subr.bf16.mxu0 %v3650_v57  ;;  %v3834_v56 = vcombine.high %v565_v51, %v569_v52  ;;  %v445_v57 = vld [vmem:[%s4677_s16 + $0x290] sm:$0xff]  ;;  %v370_v50 = vld [vmem:[%s4677_s16 + $0x38] sm:$0xff]  ;;  %v3881_v52 = vcombine.low %v613_v41, %v617_v42 }
 0x175   : > { %2958 = vmatprep.subr.bf16.mxu1 %v3778_v58  ;;  %v449_v58 = vld [vmem:[%s4677_s16 + $0x2b0] sm:$0xff] }
 0x176   : > { %v3713_v7 = vcombine.low %v445_v57, %v449_v58 }
 0x177   : > { %2918 = vmatpush1.bf16.msra.mxu0 %v3649_v1  ;;  %v3714_v1 = vcombine.high %v445_v57, %v449_v58  ;;  %v374_v57 = vld [vmem:[%s4677_s16 + $0x58] sm:$0xff] }
 0x178   : > { %2959 = vmatpush1.bf16.msra.mxu1 %v3777_v2  ;;  %2919 = vmatprep.subr.bf16.mxu0 %v3658_v3  ;;  %v3842_v2 = vcombine.high %v573_v61, %v577_v62  ;;  %v453_v3 = vld [vmem:[%s4677_s16 + $0x2d0] sm:$0xff]  ;;  %v378_v58 = vld [vmem:[%s4677_s16 + $0x78] sm:$0xff]  ;;  %v3635_v62 = vcombine.low %v366_v49, %v370_v50 }
 0x179   : > { %2960 = vmatprep.subr.bf16.mxu1 %v3786_v4  ;;  %v457_v4 = vld [vmem:[%s4677_s16 + $0x2f0] sm:$0xff] }
 0x17a   : > { %v3721_v15 = vcombine.low %v453_v3, %v457_v4 }
 0x17b   : > { %2920 = vmatpush1.bf16.msra.mxu0 %v3657_v9  ;;  %v3722_v9 = vcombine.high %v453_v3, %v457_v4  ;;  %v382_v3 = vld [vmem:[%s4677_s16 + $0x98] sm:$0xff] }
 0x17c   : > { %2961 = vmatpush1.bf16.msra.mxu1 %v3785_v10  ;;  %2921 = vmatprep.subr.bf16.mxu0 %v3666_v11  ;;  %v3850_v10 = vcombine.high %v581_v5, %v585_v6  ;;  %v461_v11 = vld [vmem:[%s4677_s16 + $0x310] sm:$0xff]  ;;  %v386_v4 = vld [vmem:[%s4677_s16 + $0xb8] sm:$0xff]  ;;  %v3643_v6 = vcombine.low %v374_v57, %v378_v58 }
 0x17d   : > { %2962 = vmatprep.subr.bf16.mxu1 %v3794_v12  ;;  %v465_v12 = vld [vmem:[%s4677_s16 + $0x330] sm:$0xff] }
 0x17e   : > { %v3729_v25 = vcombine.low %v461_v11, %v465_v12 }
 0x17f   : > { %2922 = vmatpush1.bf16.msra.mxu0 %v3665_v18  ;;  %v3730_v18 = vcombine.high %v461_v11, %v465_v12  ;;  %v390_v11 = vld [vmem:[%s4677_s16 + $0xd8] sm:$0xff] }
 0x180   : > { %2963 = vmatpush1.bf16.msra.mxu1 %v3793_v19  ;;  %2923 = vmatprep.subr.bf16.mxu0 %v3674_v20  ;;  %v3858_v19 = vcombine.high %v589_v13, %v593_v14  ;;  %v469_v20 = vld [vmem:[%s4677_s16 + $0x350] sm:$0xff]  ;;  %v394_v12 = vld [vmem:[%s4677_s16 + $0xf8] sm:$0xff]  ;;  %v3651_v14 = vcombine.low %v382_v3, %v386_v4 }
 0x181   : > { %2964 = vmatprep.subr.bf16.mxu1 %v3802_v22  ;;  %v473_v22 = vld [vmem:[%s4677_s16 + $0x370] sm:$0xff] }
 0x182   : > { %v3737_v35 = vcombine.low %v469_v20, %v473_v22 }
 0x183   : > { %2924 = vmatpush1.bf16.msra.mxu0 %v3673_v27  ;;  %v3738_v27 = vcombine.high %v469_v20, %v473_v22  ;;  %v398_v20 = vld [vmem:[%s4677_s16 + $0x118] sm:$0xff] }
 0x184   : > { %2965 = vmatpush1.bf16.msra.mxu1 %v3801_v29  ;;  %2925 = vmatprep.subr.bf16.mxu0 %v3682_v30  ;;  %v3866_v29 = vcombine.high %v597_v23, %v601_v24  ;;  %v477_v30 = vld [vmem:[%s4677_s16 + $0x390] sm:$0xff]  ;;  %v402_v22 = vld [vmem:[%s4677_s16 + $0x138] sm:$0xff] }
 0x185   : > { %2966 = vmatprep.subr.bf16.mxu1 %v3810_v31  ;;  %v481_v31 = vld [vmem:[%s4677_s16 + $0x3b0] sm:$0xff] }
 0x186   : > { %v3745_v43 = vcombine.low %v477_v30, %v481_v31 }
 0x187   : > { %2926 = vmatpush1.bf16.msra.mxu0 %v3681_v37  ;;  %v3746_v37 = vcombine.high %v477_v30, %v481_v31  ;;  %v410_v30 = vld [vmem:[%s4677_s16 + $0x178] sm:$0xff] }
 0x188   : > { %2967 = vmatpush1.bf16.msra.mxu1 %v3809_v38  ;;  %2927 = vmatprep.subr.bf16.mxu0 %v3690_v39  ;;  %v3874_v38 = vcombine.high %v605_v33, %v609_v34  ;;  %v485_v39 = vld [vmem:[%s4677_s16 + $0x3d0] sm:$0xff]  ;;  %v3667_v33 = vcombine.low %v398_v20, %v402_v22 }
 0x189   : > { %2968 = vmatprep.subr.bf16.mxu1 %v3818_v40  ;;  %v489_v40 = vld [vmem:[%s4677_s16 + $0x3f0] sm:$0xff] }
 0x18a   : > { %v3753_v51 = vcombine.low %v485_v39, %v489_v40 }
 0x18b   : > { %2928 = vmatpush1.bf16.msra.mxu0 %v3689_v45  ;;  %v3754_v45 = vcombine.high %v485_v39, %v489_v40  ;;  %v418_v39 = vld [vmem:[%s4677_s16 + $0x1b8] sm:$0xff] }
 0x18c   : > { %2969 = vmatpush1.bf16.msra.mxu1 %v3817_v46  ;;  %2929 = vmatprep.subr.bf16.mxu0 %v3698_v47  ;;  %v3882_v46 = vcombine.high %v613_v41, %v617_v42  ;;  %v621_v47 = vld [vmem:[%s4677_s16 + $0x810] sm:$0xff] }
 0x18d   : > { %2970 = vmatprep.subr.bf16.mxu1 %v3826_v48  ;;  %v625_v48 = vld [vmem:[%s4677_s16 + $0x830] sm:$0xff] }
 0x18e   : > { %v3889_v61 = vcombine.low %v621_v47, %v625_v48 }
 0x18f   : > { %2930 = vmatpush1.bf16.msra.mxu0 %v3697_v53  ;;  %v3890_v53 = vcombine.high %v621_v47, %v625_v48 }
 0x190   : > { %2971 = vmatpush1.bf16.msra.mxu1 %v3825_v54  ;;  %2931 = vmatprep.subr.bf16.mxu0 %v3706_v55  ;;  %v3636_v54 = vcombine.high %v366_v49, %v370_v50  ;;  %v629_v55 = vld [vmem:[%s4677_s16 + $0x850] sm:$0xff]  ;;  %v422_v49 = vld [vmem:[%s4677_s16 + $0x1d8] sm:$0xff] }
 0x191   : > { %2972 = vmatprep.subr.bf16.mxu1 %v3834_v56  ;;  %v633_v56 = vld [vmem:[%s4677_s16 + $0x870] sm:$0xff]  ;;  %v426_v50 = vld [vmem:[%s4677_s16 + $0x1f8] sm:$0xff] }
 0x192   : > { %v3897_v5 = vcombine.low %v629_v55, %v633_v56 }
 0x193   : > { %2932 = vmatpush1.bf16.msra.mxu0 %v3705_v63  ;;  %v3898_v63 = vcombine.high %v629_v55, %v633_v56 }
 0x194   : > { %2973 = vmatpush1.bf16.msra.mxu1 %v3833_v0  ;;  %2933 = vmatprep.subr.bf16.mxu0 %v3714_v1  ;;  %v3644_v0 = vcombine.high %v374_v57, %v378_v58  ;;  %v637_v1 = vld [vmem:[%s4677_s16 + $0x890] sm:$0xff] }
 0x195   : > { %2974 = vmatprep.subr.bf16.mxu1 %v3842_v2  ;;  %v641_v2 = vld [vmem:[%s4677_s16 + $0x8b0] sm:$0xff] }
 0x196   : > { %v3905_v13 = vcombine.low %v637_v1, %v641_v2 }
 0x197   : > { %2934 = vmatpush1.bf16.msra.mxu0 %v3713_v7  ;;  %v3906_v7 = vcombine.high %v637_v1, %v641_v2  ;;  %v689_v1 = vld [vmem:[%s4677_s16 + $0xa30] sm:$0xff]  ;;  %v430_v2 = vld [vmem:[%s4677_s16 + $0x218] sm:$0xff] }
 0x198   : > { %2975 = vmatpush1.bf16.msra.mxu1 %v3841_v8  ;;  %2935 = vmatprep.subr.bf16.mxu0 %v3722_v9  ;;  %v3652_v8 = vcombine.high %v382_v3, %v386_v4  ;;  %v645_v9 = vld [vmem:[%s4677_s16 + $0x8d0] sm:$0xff]  ;;  %v434_v3 = vld [vmem:[%s4677_s16 + $0x238] sm:$0xff] }
 0x199   : > { %2976 = vmatprep.subr.bf16.mxu1 %v3850_v10  ;;  %v649_v10 = vld [vmem:[%s4677_s16 + $0x8f0] sm:$0xff] }
 0x19a   : > { %v3913_v23 = vcombine.low %v645_v9, %v649_v10 }
 0x19b   : > { %2936 = vmatpush1.bf16.msra.mxu0 %v3721_v15  ;;  %v3914_v15 = vcombine.high %v645_v9, %v649_v10  ;;  %v697_v9 = vld [vmem:[%s4677_s16 + $0xa70] sm:$0xff]  ;;  %v438_v10 = vld [vmem:[%s4677_s16 + $0x258] sm:$0xff] }
 0x19c   : > { %2977 = vmatpush1.bf16.msra.mxu1 %v3849_v16  ;;  %2937 = vmatprep.subr.bf16.mxu0 %v3730_v18  ;;  %v3660_v16 = vcombine.high %v390_v11, %v394_v12  ;;  %v653_v18 = vld [vmem:[%s4677_s16 + $0x910] sm:$0xff] }
 0x19d   : > { %2978 = vmatprep.subr.bf16.mxu1 %v3858_v19  ;;  %v657_v19 = vld [vmem:[%s4677_s16 + $0x930] sm:$0xff] }
 0x19e   : > { %v3922_v24 = vcombine.high %v653_v18, %v657_v19  ;;  %v3921_v31 = vcombine.low %v653_v18, %v657_v19  ;;  %v705_v18 = vld [vmem:[%s4677_s16 + $0xab0] sm:$0xff]  ;;  %v446_v19 = vld [vmem:[%s4677_s16 + $0x298] sm:$0xff] }
 0x19f   : > { %2938 = vmatpush1.bf16.msra.mxu0 %v3729_v25  ;;  %v3668_v25 = vcombine.high %v398_v20, %v402_v22  ;;  %v450_v20 = vld [vmem:[%s4677_s16 + $0x2b8] sm:$0xff] }
 0x1a0   : > { %2979 = vmatpush1.bf16.msra.mxu1 %v3857_v26  ;;  %2939 = vmatprep.subr.bf16.mxu0 %v3738_v27  ;;  %v661_v26 = vld [vmem:[%s4677_s16 + $0x950] sm:$0xff] }
 0x1a1   : > { %2980 = vmatprep.subr.bf16.mxu1 %v3866_v29  ;;  %v665_v27 = vld [vmem:[%s4677_s16 + $0x970] sm:$0xff]  ;;  %v406_v29 = vld [vmem:[%s4677_s16 + $0x158] sm:$0xff] }
 0x1a2   : > { %v3930_v34 = vcombine.high %v661_v26, %v665_v27  ;;  %v3929_v40 = vcombine.low %v661_v26, %v665_v27  ;;  %v3675_v41 = vcombine.low %v406_v29, %v410_v30  ;;  %v713_v26 = vld [vmem:[%s4677_s16 + $0xaf0] sm:$0xff]  ;;  %v454_v27 = vld [vmem:[%s4677_s16 + $0x2d8] sm:$0xff] }
 0x1a3   : > { %2940 = vmatpush1.bf16.msra.mxu0 %v3737_v35  ;;  %v3676_v35 = vcombine.high %v406_v29, %v410_v30  ;;  %v458_v29 = vld [vmem:[%s4677_s16 + $0x2f8] sm:$0xff] }
 0x1a4   : > { %2981 = vmatpush1.bf16.msra.mxu1 %v3865_v36  ;;  %2941 = vmatprep.subr.bf16.mxu0 %v3746_v37  ;;  %v669_v36 = vld [vmem:[%s4677_s16 + $0x990] sm:$0xff] }
 0x1a5   : > { %2982 = vmatprep.subr.bf16.mxu1 %v3874_v38  ;;  %v673_v37 = vld [vmem:[%s4677_s16 + $0x9b0] sm:$0xff]  ;;  %v414_v38 = vld [vmem:[%s4677_s16 + $0x198] sm:$0xff] }
 0x1a6   : > { %v3938_v42 = vcombine.high %v669_v36, %v673_v37  ;;  %v3683_v58 = vcombine.low %v414_v38, %v418_v39 }
 0x1a7   : > { %2942 = vmatpush1.bf16.msra.mxu0 %v3745_v43 }
 0x1a8   : > { %2983 = vmatpush1.bf16.msra.mxu1 %v3873_v44  ;;  %2943 = vmatprep.subr.bf16.mxu0 %v3754_v45  ;;  %v3684_v44 = vcombine.high %v414_v38, %v418_v39  ;;  %v677_v45 = vld [vmem:[%s4677_s16 + $0x9d0] sm:$0xff]  ;;  %v466_v38 = vld [vmem:[%s4677_s16 + $0x338] sm:$0xff] }
 0x1a9   : > { %2984 = vmatprep.subr.bf16.mxu1 %v3882_v46  ;;  %v681_v46 = vld [vmem:[%s4677_s16 + $0x9f0] sm:$0xff] }
 0x1aa   : > { %v3945_v4 = vcombine.low %v677_v45, %v681_v46 }
 0x1ab   : > { %2944 = vmatpush1.bf16.msra.mxu0 %v3753_v51 }
 0x1ac   : > { %2985 = vmatpush1.bf16.msra.mxu1 %v3881_v52  ;;  %2995 = vmatprep.subr.bf16.mxu0 %v3890_v53 }
 0x1ad   : > { %3036 = vmatprep.subr.bf16.mxu1 %v3636_v54  ;;  %v3937_v54 = vcombine.low %v669_v36, %v673_v37  ;;  %v721_v36 = vld [vmem:[%s4677_s16 + $0xb30] sm:$0xff]  ;;  %v462_v37 = vld [vmem:[%s4677_s16 + $0x318] sm:$0xff] }
 0x1ae   : > { %2946 = vmatmul.mubr.bf16.vlgmr.msra.gmra.mrb[12].mxu0 %v4772_v17 }
 0x1af   : > { %2987 = vmatmul.mubr.bf16.vlgmr.msra.gmra.mrb[12].mxu1 %v4777_v21  ;;  %2996 = vmatpush1.bf16.msra.mxu0 %v3889_v61  ;;  %v3946_v61 = vcombine.high %v677_v45, %v681_v46  ;;  %v470_v45 = vld [vmem:[%s4677_s16 + $0x358] sm:$0xff] }
 0x1b0   : > { %3037 = vmatpush1.bf16.msra.mxu1 %v3635_v62  ;;  %2997 = vmatprep.subr.bf16.mxu0 %v3898_v63  ;;  %v3692_v63 = vcombine.high %v422_v49, %v426_v50  ;;  %v474_v46 = vld [vmem:[%s4677_s16 + $0x378] sm:$0xff] }
 0x1b1   : > { %3038 = vmatprep.subr.bf16.mxu1 %v3644_v0  ;;  %3027 = vmatprep.mubr.bf16.mxu0 %v4781_v28  ;;  %v685_v0 = vld [vmem:[%s4677_s16 + $0xa10] sm:$0xff] }
 0x1b2   : > { %3068 = vmatprep.mubr.bf16.mxu1 %v4724_v59  ;;  %v3659_v59 = vcombine.low %v390_v11, %v394_v12  ;;  %v442_v11 = vld [vmem:[%s4677_s16 + $0x278] sm:$0xff]  ;;  %v3953_v12 = vcombine.low %v685_v0, %v689_v1 }
 0x1b3   : > { %2998 = vmatpush1.bf16.msra.mxu0 %v3897_v5  ;;  %v3691_v5 = vcombine.low %v422_v49, %v426_v50  ;;  %v3740_v50 = vcombine.high %v470_v45, %v474_v46 }
 0x1b4   : > { %3039 = vmatpush1.bf16.msra.mxu1 %v3643_v6  ;;  %2999 = vmatprep.subr.bf16.mxu0 %v3906_v7  ;;  %v3954_v6 = vcombine.high %v685_v0, %v689_v1  ;;  %v3700_v7 = vcombine.high %v430_v2, %v434_v3  ;;  %v745_v0 = vld [vmem:[%s4677_s16 + $0xbf0] sm:$0xff]  ;;  %v486_v1 = vld [vmem:[%s4677_s16 + $0x3d8] sm:$0xff] }
 0x1b5   : > { %3040 = vmatprep.subr.bf16.mxu1 %v3652_v8  ;;  %v693_v8 = vld [vmem:[%s4677_s16 + $0xa50] sm:$0xff] }
 0x1b6   : > { %v3961_v22 = vcombine.low %v693_v8, %v697_v9 }
 0x1b7   : > { %3000 = vmatpush1.bf16.msra.mxu0 %v3905_v13  ;;  %v3699_v13 = vcombine.low %v430_v2, %v434_v3  ;;  %v490_v2 = vld [vmem:[%s4677_s16 + $0x3f8] sm:$0xff] }
 0x1b8   : > { %3041 = vmatpush1.bf16.msra.mxu1 %v3651_v14  ;;  %3001 = vmatprep.subr.bf16.mxu0 %v3914_v15  ;;  %v3962_v14 = vcombine.high %v693_v8, %v697_v9  ;;  %v3708_v15 = vcombine.high %v438_v10, %v442_v11  ;;  %v498_v8 = vld [vmem:[%s4677_s16 + $0x438] sm:$0xff] }
 0x1b9   : > { %3042 = vmatprep.subr.bf16.mxu1 %v3660_v16  ;;  %v701_v16 = vld [vmem:[%s4677_s16 + $0xa90] sm:$0xff]  ;;  %v622_v9 = vld [vmem:[%s4677_s16 + $0x818] sm:$0xff] }
 0x1ba   : > { %v3969_v30 = vcombine.low %v701_v16, %v705_v18 }
 0x1bb   : > { %3002 = vmatpush1.bf16.msra.mxu0 %v3913_v23  ;;  %v3707_v23 = vcombine.low %v438_v10, %v442_v11  ;;  %v626_v10 = vld [vmem:[%s4677_s16 + $0x838] sm:$0xff] }
 0x1bc   : > { %3043 = vmatpush1.bf16.msra.mxu1 %v3659_v59  ;;  %3003 = vmatprep.subr.bf16.mxu0 %v3922_v24  ;;  %v3970_v59 = vcombine.high %v701_v16, %v705_v18  ;;  %v3716_v24 = vcombine.high %v446_v19, %v450_v20  ;;  %v506_v16 = vld [vmem:[%s4677_s16 + $0x478] sm:$0xff] }
 0x1bd   : > { %3044 = vmatprep.subr.bf16.mxu1 %v3668_v25  ;;  %v709_v25 = vld [vmem:[%s4677_s16 + $0xad0] sm:$0xff]  ;;  %v630_v18 = vld [vmem:[%s4677_s16 + $0x858] sm:$0xff] }
 0x1be   : > { %v3977_v39 = vcombine.low %v709_v25, %v713_v26 }
 0x1bf   : > { %3004 = vmatpush1.bf16.msra.mxu0 %v3921_v31  ;;  %v3715_v31 = vcombine.low %v446_v19, %v450_v20  ;;  %v634_v19 = vld [vmem:[%s4677_s16 + $0x878] sm:$0xff] }
 0x1c0   : > { %3045 = vmatpush1.bf16.msra.mxu1 %v3667_v33  ;;  %3005 = vmatprep.subr.bf16.mxu0 %v3930_v34  ;;  %v3978_v33 = vcombine.high %v709_v25, %v713_v26  ;;  %v3724_v34 = vcombine.high %v454_v27, %v458_v29  ;;  %v514_v25 = vld [vmem:[%s4677_s16 + $0x4b8] sm:$0xff] }
 0x1c1   : > { %v2701_v43 = vpop.f32.mrb[0].mxu0  ;;  %3046 = vmatprep.subr.bf16.mxu1 %v3676_v35  ;;  %v717_v35 = vld [vmem:[%s4677_s16 + $0xb10] sm:$0xff]  ;;  %v638_v26 = vld [vmem:[%s4677_s16 + $0x898] sm:$0xff] }
 0x1c2   : > { %v2742_v47 = vpop.f32.mrb[0].mxu1  ;;  %v2703_v48 = vpop.f32.mrb[1].mxu0 }
 0x1c3   : > { %v5016_v51 = vadd.f32 %v2742_v47, %v2701_v43  ;;  %v2744_v52 = vpop.f32.mrb[1].mxu1  ;;  %v2705_v53 = vpop.f32.mrb[2].mxu0  ;;  %3006 = vmatpush1.bf16.msra.mxu0 %v3929_v40  ;;  %v3723_v40 = vcombine.low %v454_v27, %v458_v29  ;;  %v725_v43 = vld [vmem:[%s4677_s16 + $0xb50] sm:$0xff]  ;;  %v3985_v47 = vcombine.low %v717_v35, %v721_v36  ;;  %v642_v27 = vld [vmem:[%s4677_s16 + $0x8b8] sm:$0xff] }
 0x1c4   : > { %v5018_v55 = vadd.f32 %v2744_v52, %v2703_v48  ;;  %v2746_v56 = vpop.f32.mrb[2].mxu1  ;;  %3047 = vmatpush1.bf16.msra.mxu1 %v3675_v41  ;;  %v2706_v57 = vpop.f32.mrb[3].mxu0  ;;  %3007 = vmatprep.subr.bf16.mxu0 %v3938_v42  ;;  %v3986_v41 = vcombine.high %v717_v35, %v721_v36  ;;  %v3732_v42 = vcombine.high %v462_v37, %v466_v38  ;;  %v733_v52 = vld [vmem:[%s4677_s16 + $0xb90] sm:$0xff]  ;;  %v522_v35 = vld [vmem:[%s4677_s16 + $0x4f8] sm:$0xff] }
 0x1c5   : > { %v2747_v62 = vpop.f32.mrb[3].mxu1  ;;  %3048 = vmatprep.subr.bf16.mxu1 %v3684_v44  ;;  %v729_v44 = vld [vmem:[%s4677_s16 + $0xb70] sm:$0xff]  ;;  %v3731_v48 = vcombine.low %v462_v37, %v466_v38  ;;  %v482_v56 = vld [vmem:[%s4677_s16 + $0x3b8] sm:$0xff]  ;;  %v3907_v38 = vcombine.low %v638_v26, %v642_v27 }
 0x1c6   : > { %v3994_v49 = vcombine.high %v725_v43, %v729_v44  ;;  %v737_v53 = vld [vmem:[%s4677_s16 + $0xbb0] sm:$0xff]  ;;  %v3993_v57 = vcombine.low %v725_v43, %v729_v44  ;;  %v646_v36 = vld [vmem:[%s4677_s16 + $0x8d8] sm:$0xff] }
 0x1c7   : > { %3008 = vmatpush1.bf16.msra.mxu0 %v3937_v54  ;;  %v478_v54 = vld [vmem:[%s4677_s16 + $0x398] sm:$0xff]  ;;  %v4001_v3 = vcombine.low %v733_v52, %v737_v53 }
 0x1c8   : > { %3049 = vmatpush1.bf16.msra.mxu1 %v3683_v58  ;;  %3009 = vmatprep.subr.bf16.mxu0 %v3946_v61  ;;  %v3739_v58 = vcombine.low %v470_v45, %v474_v46  ;;  %v4002_v61 = vcombine.high %v733_v52, %v737_v53  ;;  %v3748_v62 = vcombine.high %v478_v54, %v482_v56  ;;  %v650_v37 = vld [vmem:[%s4677_s16 + $0x8f8] sm:$0xff] }
 0x1c9   : > { %3050 = vmatprep.subr.bf16.mxu1 %v3692_v63  ;;  %v741_v63 = vld [vmem:[%s4677_s16 + $0xbd0] sm:$0xff]  ;;  %v654_v43 = vld [vmem:[%s4677_s16 + $0x918] sm:$0xff] }
 0x1ca   : > { %v4009_v11 = vcombine.low %v741_v63, %v745_v0 }
 0x1cb   : > { %3010 = vmatpush1.bf16.msra.mxu0 %v3945_v4  ;;  %v3747_v4 = vcombine.low %v478_v54, %v482_v56 }
 0x1cc   : > { %3051 = vmatpush1.bf16.msra.mxu1 %v3691_v5  ;;  %3011 = vmatprep.subr.bf16.mxu0 %v3954_v6  ;;  %v4010_v5 = vcombine.high %v741_v63, %v745_v0  ;;  %v3756_v6 = vcombine.high %v486_v1, %v490_v2 }
 0x1cd   : > { %3052 = vmatprep.subr.bf16.mxu1 %v3700_v7  ;;  %v494_v7 = vld [vmem:[%s4677_s16 + $0x418] sm:$0xff] }
 0x1ce   : > { %v3763_v20 = vcombine.low %v494_v7, %v498_v8 }
 0x1cf   : > { %3012 = vmatpush1.bf16.msra.mxu0 %v3953_v12  ;;  %v3755_v12 = vcombine.low %v486_v1, %v490_v2  ;;  %v355_v2 = vld [vmem:[#allocation2] sm:$0xff] }
 0x1d0   : > { %3053 = vmatpush1.bf16.msra.mxu1 %v3699_v13  ;;  %3013 = vmatprep.subr.bf16.mxu0 %v3962_v14  ;;  %v3764_v13 = vcombine.high %v494_v7, %v498_v8  ;;  %v3892_v14 = vcombine.high %v622_v9, %v626_v10 }
 0x1d1   : > { %3054 = vmatprep.subr.bf16.mxu1 %v3708_v15  ;;  %v502_v15 = vld [vmem:[%s4677_s16 + $0x458] sm:$0xff] }
 0x1d2   : > { %v3771_v29 = vcombine.low %v502_v15, %v506_v16 }
 0x1d3   : > { %3014 = vmatpush1.bf16.msra.mxu0 %v3961_v22  ;;  %v3891_v22 = vcombine.low %v622_v9, %v626_v10  ;;  %v356_v9 = vld [vmem:[#allocation2 + $0x8] sm:$0xff] }
 0x1d4   : > { %3055 = vmatpush1.bf16.msra.mxu1 %v3707_v23  ;;  %3015 = vmatprep.subr.bf16.mxu0 %v3970_v59  ;;  %v3772_v23 = vcombine.high %v502_v15, %v506_v16  ;;  %v3900_v59 = vcombine.high %v630_v18, %v634_v19 }
 0x1d5   : > { %3056 = vmatprep.subr.bf16.mxu1 %v3716_v24  ;;  %v510_v24 = vld [vmem:[%s4677_s16 + $0x498] sm:$0xff] }
 0x1d7   : > { %3016 = vmatpush1.bf16.msra.mxu0 %v3969_v30  ;;  %v3899_v30 = vcombine.low %v630_v18, %v634_v19 }
 0x1d8   : > { %3057 = vmatpush1.bf16.msra.mxu1 %v3715_v31  ;;  %3017 = vmatprep.subr.bf16.mxu0 %v3978_v33  ;;  %v3780_v31 = vcombine.high %v510_v24, %v514_v25  ;;  %v3908_v33 = vcombine.high %v638_v26, %v642_v27  ;;  %v686_v26 = vld [vmem:[%s4677_s16 + $0xa18] sm:$0xff] }
 0x1d9   : > { %3058 = vmatprep.subr.bf16.mxu1 %v3724_v34  ;;  %v518_v34 = vld [vmem:[%s4677_s16 + $0x4d8] sm:$0xff] }
 0x1da   : > { %v3787_v44 = vcombine.low %v518_v34, %v522_v35  ;;  %v690_v27 = vld [vmem:[%s4677_s16 + $0xa38] sm:$0xff] }
 0x1db   : > { %3018 = vmatpush1.bf16.msra.mxu0 %v3977_v39  ;;  %v3788_v39 = vcombine.high %v518_v34, %v522_v35  ;;  %v566_v34 = vld [vmem:[%s4677_s16 + $0x658] sm:$0xff] }
 0x1dc   : > { %3059 = vmatpush1.bf16.msra.mxu1 %v3723_v40  ;;  %3019 = vmatprep.subr.bf16.mxu0 %v3986_v41  ;;  %v3916_v40 = vcombine.high %v646_v36, %v650_v37  ;;  %v526_v41 = vld [vmem:[%s4677_s16 + $0x518] sm:$0xff] }
 0x1dd   : > { %3060 = vmatprep.subr.bf16.mxu1 %v3732_v42  ;;  %v530_v42 = vld [vmem:[%s4677_s16 + $0x538] sm:$0xff] }
 0x1de   : > { %v3796_v45 = vcombine.high %v526_v41, %v530_v42  ;;  %v3795_v52 = vcombine.low %v526_v41, %v530_v42  ;;  %v570_v35 = vld [vmem:[%s4677_s16 + $0x678] sm:$0xff] }
 0x1df   : > { %3020 = vmatpush1.bf16.msra.mxu0 %v3985_v47  ;;  %v534_v47 = vld [vmem:[%s4677_s16 + $0x558] sm:$0xff] }
 0x1e0   : > { %3061 = vmatpush1.bf16.msra.mxu1 %v3731_v48  ;;  %3021 = vmatprep.subr.bf16.mxu0 %v3994_v49  ;;  %v538_v48 = vld [vmem:[%s4677_s16 + $0x578] sm:$0xff] }
 0x1e1   : > { %3062 = vmatprep.subr.bf16.mxu1 %v3740_v50  ;;  %v662_v49 = vld [vmem:[%s4677_s16 + $0x958] sm:$0xff]  ;;  %v3804_v54 = vcombine.high %v534_v47, %v538_v48  ;;  %v3803_v63 = vcombine.low %v534_v47, %v538_v48 }
 0x1e2   : > { %v666_v50 = vld [vmem:[%s4677_s16 + $0x978] sm:$0xff] }
 0x1e3   : > { %3022 = vmatpush1.bf16.msra.mxu0 %v3993_v57  ;;  %v3932_v56 = vcombine.high %v662_v49, %v666_v50  ;;  %v542_v57 = vld [vmem:[%s4677_s16 + $0x598] sm:$0xff]  ;;  %v3931_v0 = vcombine.low %v662_v49, %v666_v50 }
 0x1e4   : > { %3063 = vmatpush1.bf16.msra.mxu1 %v3739_v58  ;;  %3023 = vmatprep.subr.bf16.mxu0 %v4002_v61  ;;  %v546_v58 = vld [vmem:[%s4677_s16 + $0x5b8] sm:$0xff] }
 0x1e5   : > { %3064 = vmatprep.subr.bf16.mxu1 %v3748_v62  ;;  %v670_v61 = vld [vmem:[%s4677_s16 + $0x998] sm:$0xff]  ;;  %v3812_v1 = vcombine.high %v542_v57, %v546_v58  ;;  %v3811_v16 = vcombine.low %v542_v57, %v546_v58 }
 0x1e6   : > { %v674_v62 = vld [vmem:[%s4677_s16 + $0x9b8] sm:$0xff] }
 0x1e7   : > { %3024 = vmatpush1.bf16.msra.mxu0 %v4001_v3  ;;  %v574_v41 = vld [vmem:[%s4677_s16 + $0x698] sm:$0xff] }
 0x1e8   : > { %3065 = vmatpush1.bf16.msra.mxu1 %v3747_v4  ;;  %3025 = vmatprep.subr.bf16.mxu0 %v4010_v5  ;;  %v3940_v4 = vcombine.high %v670_v61, %v674_v62  ;;  %v550_v5 = vld [vmem:[%s4677_s16 + $0x5d8] sm:$0xff] }
 0x1e9   : > { %3066 = vmatprep.subr.bf16.mxu1 %v3756_v6  ;;  %v554_v6 = vld [vmem:[%s4677_s16 + $0x5f8] sm:$0xff] }
 0x1ea   : > { %v578_v42 = vld [vmem:[%s4677_s16 + $0x6b8] sm:$0xff] }
 0x1eb   : > { %3026 = vmatpush1.bf16.msra.mxu0 %v4009_v11  ;;  %v678_v11 = vld [vmem:[%s4677_s16 + $0x9d8] sm:$0xff] }
 0x1ec   : > { %3067 = vmatpush1.bf16.msra.mxu1 %v3755_v12  ;;  %3077 = vmatprep.subr.bf16.mxu0 %v3764_v13  ;;  %v682_v12 = vld [vmem:[%s4677_s16 + $0x9f8] sm:$0xff] }
 0x1ed   : > { %3118 = vmatprep.subr.bf16.mxu1 %v3892_v14  ;;  %v582_v47 = vld [vmem:[%s4677_s16 + $0x6d8] sm:$0xff] }
 0x1ee   : > { %3028 = vmatmul.mubr.bf16.vlgmr.msra.gmra.mrb[16].mxu0 %v4848_v32  ;;  %v586_v48 = vld [vmem:[%s4677_s16 + $0x6f8] sm:$0xff] }
 0x1ef   : > { %3069 = vmatmul.mubr.bf16.vlgmr.msra.gmra.mrb[16].mxu1 %v4772_v17  ;;  %3078 = vmatpush1.bf16.msra.mxu0 %v3763_v20  ;;  %v3779_v17 = vcombine.low %v510_v24, %v514_v25  ;;  %v3939_v20 = vcombine.low %v670_v61, %v674_v62  ;;  %v558_v24 = vld [vmem:[%s4677_s16 + $0x618] sm:$0xff] }
 0x1f0   : > { %3119 = vmatpush1.bf16.msra.mxu1 %v3891_v22  ;;  %3079 = vmatprep.subr.bf16.mxu0 %v3772_v23  ;;  %v3820_v22 = vcombine.high %v550_v5, %v554_v6  ;;  %v562_v25 = vld [vmem:[%s4677_s16 + $0x638] sm:$0xff] }
 0x1f1   : > { %3120 = vmatprep.subr.bf16.mxu1 %v3900_v59  ;;  %3109 = vmatprep.mubr.bf16.mxu0 %v4726_v60  ;;  %v658_v60 = vld [vmem:[%s4677_s16 + $0x938] sm:$0xff] }
 0x1f2   : > { %3150 = vmatprep.mubr.bf16.mxu1 %v4781_v28  ;;  %v3915_v28 = vcombine.low %v646_v36, %v650_v37  ;;  %v3924_v46 = vcombine.high %v654_v43, %v658_v60  ;;  %v3923_v53 = vcombine.low %v654_v43, %v658_v60  ;;  %v694_v36 = vld [vmem:[%s4677_s16 + $0xa58] sm:$0xff] }
 0x1f3   : > { %3080 = vmatpush1.bf16.msra.mxu0 %v3771_v29  ;;  %v3819_v29 = vcombine.low %v550_v5, %v554_v6  ;;  %v698_v37 = vld [vmem:[%s4677_s16 + $0xa78] sm:$0xff] }
 0x1f4   : > { %3121 = vmatpush1.bf16.msra.mxu1 %v3899_v30  ;;  %3081 = vmatprep.subr.bf16.mxu0 %v3780_v31  ;;  %v3947_v30 = vcombine.low %v678_v11, %v682_v12  ;;  %v3828_v31 = vcombine.high %v558_v24, %v562_v25  ;;  %v702_v43 = vld [vmem:[%s4677_s16 + $0xa98] sm:$0xff] }
 0x1f5   : > { %3122 = vmatprep.subr.bf16.mxu1 %v3908_v33  ;;  %v3956_v33 = vcombine.high %v686_v26, %v690_v27  ;;  %v706_v60 = vld [vmem:[%s4677_s16 + $0xab8] sm:$0xff] }
 0x1f6   : > { %v710_v49 = vld [vmem:[%s4677_s16 + $0xad8] sm:$0xff] }
 0x1f7   : > { %3082 = vmatpush1.bf16.msra.mxu0 %v3779_v17  ;;  %v3827_v17 = vcombine.low %v558_v24, %v562_v25  ;;  %v714_v50 = vld [vmem:[%s4677_s16 + $0xaf8] sm:$0xff] }
 0x1f8   : > { %3123 = vmatpush1.bf16.msra.mxu1 %v3907_v38  ;;  %3083 = vmatprep.subr.bf16.mxu0 %v3788_v39  ;;  %v3955_v38 = vcombine.low %v686_v26, %v690_v27  ;;  %v3836_v39 = vcombine.high %v566_v34, %v570_v35  ;;  %v590_v57 = vld [vmem:[%s4677_s16 + $0x718] sm:$0xff] }
 0x1f9   : > { %3124 = vmatprep.subr.bf16.mxu1 %v3916_v40  ;;  %v3964_v40 = vcombine.high %v694_v36, %v698_v37  ;;  %v594_v58 = vld [vmem:[%s4677_s16 + $0x738] sm:$0xff] }
 0x1fa   : > { %v718_v61 = vld [vmem:[%s4677_s16 + $0xb18] sm:$0xff] }
 0x1fb   : > { %3084 = vmatpush1.bf16.msra.mxu0 %v3787_v44  ;;  %v3835_v44 = vcombine.low %v566_v34, %v570_v35  ;;  %v722_v62 = vld [vmem:[%s4677_s16 + $0xb38] sm:$0xff] }
 0x1fc   : > { %3125 = vmatpush1.bf16.msra.mxu1 %v3915_v28  ;;  %3085 = vmatprep.subr.bf16.mxu0 %v3796_v45  ;;  %v3963_v28 = vcombine.low %v694_v36, %v698_v37  ;;  %v3844_v45 = vcombine.high %v574_v41, %v578_v42  ;;  %v726_v5 = vld [vmem:[%s4677_s16 + $0xb58] sm:$0xff]  ;;  %v357_v36 = vld [vmem:[#allocation2 + $0x10] sm:$0xff] }
 0x1fd   : > { %3126 = vmatprep.subr.bf16.mxu1 %v3924_v46  ;;  %v3972_v46 = vcombine.high %v702_v43, %v706_v60  ;;  %v730_v6 = vld [vmem:[%s4677_s16 + $0xb78] sm:$0xff] }
 0x1ff   : > { %3086 = vmatpush1.bf16.msra.mxu0 %v3795_v52  ;;  %v3843_v52 = vcombine.low %v574_v41, %v578_v42 }
 0x200   : > { %3127 = vmatpush1.bf16.msra.mxu1 %v3923_v53  ;;  %3087 = vmatprep.subr.bf16.mxu0 %v3804_v54  ;;  %v3971_v53 = vcombine.low %v702_v43, %v706_v60  ;;  %v3852_v54 = vcombine.high %v582_v47, %v586_v48 }
 0x201   : > { %v2783_v3 = vpop.f32.mrb[4].mxu0  ;;  %3128 = vmatprep.subr.bf16.mxu1 %v3932_v56  ;;  %v3980_v56 = vcombine.high %v710_v49, %v714_v50 }
 0x202   : > { %v2784_v7 = vadd.f32 %v2783_v3, %v5016_v51  ;;  %v5087_v8 = vpop.f32.mrb[4].mxu1  ;;  %v2785_v10 = vpop.f32.mrb[5].mxu0  ;;  %v598_v3 = vld [vmem:[%s4677_s16 + $0x758] sm:$0xff] }
 0x203   : > { %v2786_v13 = vadd.f32 %v2785_v10, %v5018_v55  ;;  %v5092_v14 = vpop.f32.mrb[5].mxu1  ;;  %v2787_v15 = vpop.f32.mrb[6].mxu0  ;;  %3088 = vmatpush1.bf16.msra.mxu0 %v3803_v63  ;;  %v3948_v55 = vcombine.high %v678_v11, %v682_v12  ;;  %v3851_v63 = vcombine.low %v582_v47, %v586_v48  ;;  %v3996_v11 = vcombine.high %v726_v5, %v730_v6  ;;  %v606_v12 = vld [vmem:[%s4677_s16 + $0x798] sm:$0xff] }
 0x204   : > { %v3159_v18 = vadd.f32 %v2784_v7, %v355_v2  ;;  %v2828_v19 = vpop.f32.mrb[6].mxu1  ;;  %3129 = vmatpush1.bf16.msra.mxu1 %v3931_v0  ;;  %v2788_v51 = vpop.f32.mrb[7].mxu0  ;;  %3089 = vmatprep.subr.bf16.mxu0 %v3812_v1  ;;  %v3979_v0 = vcombine.low %v710_v49, %v714_v50  ;;  %v3860_v1 = vcombine.high %v590_v57, %v594_v58  ;;  %v734_v15 = vld [vmem:[%s4677_s16 + $0xb98] sm:$0xff] }
 0x205   : > { %v3160_v23 = vadd.f32 %v2786_v13, %v356_v9  ;;  %v2829_v59 = vpop.f32.mrb[7].mxu1  ;;  %3130 = vmatprep.subr.bf16.mxu1 %v3940_v4  ;;  %v3988_v2 = vcombine.high %v718_v61, %v722_v62  ;;  %v602_v4 = vld [vmem:[%s4677_s16 + $0x778] sm:$0xff]  ;;  %v3859_v7 = vcombine.low %v590_v57, %v594_v58  ;;  %v3987_v9 = vcombine.low %v718_v61, %v722_v62  ;;  %v360_v57 = vld [vmem:[#allocation2 + $0x28] sm:$0xff] }
 0x206   : > { %3167 = vst [vmem:[#allocation2] sm:$0xff] %v3159_v18  ;;  %v3868_v10 = vcombine.high %v598_v3, %v602_v4  ;;  %v610_v13 = vld [vmem:[%s4677_s16 + $0x7b8] sm:$0xff]  ;;  %v3867_v18 = vcombine.low %v598_v3, %v602_v4  ;;  %v3995_v19 = vcombine.low %v726_v5, %v730_v6 }
 0x207   : > { %3168 = vst [vmem:[#allocation2 + $0x8] sm:$0xff] %v3160_v23  ;;  %3090 = vmatpush1.bf16.msra.mxu0 %v3811_v16  ;;  %v738_v16 = vld [vmem:[%s4677_s16 + $0xbb8] sm:$0xff]  ;;  %v3876_v51 = vcombine.high %v606_v12, %v610_v13  ;;  %v3875_v24 = vcombine.low %v606_v12, %v610_v13 }
 0x208   : > { %3131 = vmatpush1.bf16.msra.mxu1 %v3939_v20  ;;  %3091 = vmatprep.subr.bf16.mxu0 %v3820_v22  ;;  %v4004_v20 = vcombine.high %v734_v15, %v738_v16  ;;  %v614_v22 = vld [vmem:[%s4677_s16 + $0x7d8] sm:$0xff]  ;;  %v4003_v25 = vcombine.low %v734_v15, %v738_v16 }
 0x209   : > { %3132 = vmatprep.subr.bf16.mxu1 %v3948_v55  ;;  %v618_v23 = vld [vmem:[%s4677_s16 + $0x7f8] sm:$0xff] }
 0x20a   : > { %v742_v59 = vld [vmem:[%s4677_s16 + $0xbd8] sm:$0xff]  ;;  %v3884_v26 = vcombine.high %v614_v22, %v618_v23 }
 0x20b   : > { %3092 = vmatpush1.bf16.msra.mxu0 %v3819_v29  ;;  %v746_v55 = vld [vmem:[%s4677_s16 + $0xbf8] sm:$0xff]  ;;  %v3883_v29 = vcombine.low %v614_v22, %v618_v23 }
 0x20c   : > { %3133 = vmatpush1.bf16.msra.mxu1 %v3947_v30  ;;  %3093 = vmatprep.subr.bf16.mxu0 %v3828_v31  ;;  %v4012_v27 = vcombine.high %v742_v59, %v746_v55  ;;  %v4011_v30 = vcombine.low %v742_v59, %v746_v55  ;;  %v362_v16 = vld [vmem:[#allocation2 + $0x38] sm:$0xff]  ;;  %v3189_v59 = vlaneseq (!%p4013_p13) }
 0x20d   : > { %3134 = vmatprep.subr.bf16.mxu1 %v3956_v33 }
 0x20e   : > { %v3190_v55 = vshrl.u32 (!%p4013_p13), %v3189_v59, 7 }
 0x20f   : > { %3094 = vmatpush1.bf16.msra.mxu0 %v3827_v17 }
 0x210   : > { %3135 = vmatpush1.bf16.msra.mxu1 %v3955_v38  ;;  %3095 = vmatprep.subr.bf16.mxu0 %v3836_v39 }
 0x211   : > { %3136 = vmatprep.subr.bf16.mxu1 %v3964_v40  ;;  %v358_v40 = vld [vmem:[#allocation2 + $0x18] sm:$0xff] }
 0x213   : > { %3096 = vmatpush1.bf16.msra.mxu0 %v3835_v44 }
 0x214   : > { %3137 = vmatpush1.bf16.msra.mxu1 %v3963_v28  ;;  %3097 = vmatprep.subr.bf16.mxu0 %v3844_v45 }
 0x215   : > { %3138 = vmatprep.subr.bf16.mxu1 %v3972_v46 }
 0x217   : > { %3098 = vmatpush1.bf16.msra.mxu0 %v3843_v52  ;;  %v359_v52 = vld [vmem:[#allocation2 + $0x20] sm:$0xff] }
 0x218   : > { %3139 = vmatpush1.bf16.msra.mxu1 %v3971_v53  ;;  %3099 = vmatprep.subr.bf16.mxu0 %v3852_v54 }
 0x219   : > { %3140 = vmatprep.subr.bf16.mxu1 %v3980_v56 }
 0x21b   : > { %3100 = vmatpush1.bf16.msra.mxu0 %v3851_v63 }
 0x21c   : > { %3141 = vmatpush1.bf16.msra.mxu1 %v3979_v0  ;;  %3101 = vmatprep.subr.bf16.mxu0 %v3860_v1 }
 0x21d   : > { %3142 = vmatprep.subr.bf16.mxu1 %v3988_v2 }
 0x21f   : > { %3102 = vmatpush1.bf16.msra.mxu0 %v3859_v7 }
 0x220   : > { %3143 = vmatpush1.bf16.msra.mxu1 %v3987_v9  ;;  %3103 = vmatprep.subr.bf16.mxu0 %v3868_v10  ;;  %v361_v10 = vld [vmem:[#allocation2 + $0x30] sm:$0xff] }
 0x221   : > { %3144 = vmatprep.subr.bf16.mxu1 %v3996_v11 }
 0x223   : > { %3104 = vmatpush1.bf16.msra.mxu0 %v3867_v18 }
 0x224   : > { %3145 = vmatpush1.bf16.msra.mxu1 %v3995_v19  ;;  %3105 = vmatprep.subr.bf16.mxu0 %v3876_v51 }
 0x225   : > { %3146 = vmatprep.subr.bf16.mxu1 %v4004_v20 }
 0x227   : > { %3106 = vmatpush1.bf16.msra.mxu0 %v3875_v24  ;;  %v3179_v24 = vld [vmem:[#allocation2] sm:$0xff] (!%p4013_p13) }
 0x228   : > { %3147 = vmatpush1.bf16.msra.mxu1 %v4003_v25  ;;  %3107 = vmatprep.subr.bf16.mxu0 %v3884_v26  ;;  %v3187_v25 = vld [vmem:[#allocation8] sm:$0xff] (!%p4013_p13)  ;;  %v3180_v26 = vld [vmem:[#allocation2 + $0x8] sm:$0xff] (!%p4013_p13) }
 0x229   : > { %3148 = vmatprep.subr.bf16.mxu1 %v4012_v27 }
 0x22b   : > { %3108 = vmatpush1.bf16.msra.mxu0 %v3883_v29  ;;  %v3191_v29 = vsub.s32 (!%p4013_p13), 0, %v3190_v55 }
 0x22c   : > { %3149 = vmatpush1.bf16.msra.mxu1 %v4011_v30  ;;  %v3195_v30 = vsub.s32 (!%p4013_p13), 1, %v3190_v55 }
 0x22e   : > { %3110 = vmatmul.mubr.bf16.vlgmr.msra.gmra.mrb[20].mxu0 %v4777_v21 }
 0x22f   : > { %3151 = vmatmul.mubr.bf16.vlgmr.msra.gmra.mrb[20].mxu1 %v4848_v32 }
 0x241   : > { %v2865_v31 = vpop.f32.mrb[8].mxu0 }
 0x242   : > { %v2866_v33 = vadd.f32 %v2865_v31, %v5087_v8  ;;  %v2906_v34 = vpop.f32.mrb[8].mxu1  ;;  %v2867_v35 = vpop.f32.mrb[9].mxu0  ;;  %v3199_v31 = vsub.s32 (!%p4013_p13), 2, %v3190_v55 }
 0x243   : > { %v2868_v37 = vadd.f32 %v2867_v35, %v5092_v14  ;;  %v2908_v17 = vpop.f32.mrb[9].mxu1  ;;  %v2869_v38 = vpop.f32.mrb[10].mxu0 }
 0x244   : > { %v2907_v39 = vadd.f32 %v2906_v34, %v2866_v33  ;;  %v2910_v41 = vpop.f32.mrb[10].mxu1  ;;  %v2870_v42 = vpop.f32.mrb[11].mxu0  ;;  %v3203_v33 = vsub.s32 (!%p4013_p13), 3, %v3190_v55  ;;  %v3219_v38 = vsub.s32 (!%p4013_p13), 7, %v3190_v55 }
 0x245   : > { %v2909_v43 = vadd.f32 %v2908_v17, %v2868_v37  ;;  %v2911_v60 = vpop.f32.mrb[11].mxu1  ;;  %v3211_v37 = vsub.s32 (!%p4013_p13), 5, %v3190_v55  ;;  %v3215_v17 = vsub.s32 (!%p4013_p13), 6, %v3190_v55  ;;  %v3192_v42 = vrot.slane (!%p4013_p13), %v3187_v25, %v3191_v29 }
 0x246   : > { %v3161_v44 = vadd.f32 %v2907_v39, %v357_v36  ;;  %v3207_v36 = vsub.s32 (!%p4013_p13), 4, %v3190_v55  ;;  %v3200_v60 = vrot.slane (!%p4013_p13), %v3187_v25, %v3199_v31 }
 0x247   : > { %v3162_v21 = vadd.f32 %v2909_v43, %v358_v40  ;;  %v3196_v43 = vrot.slane (!%p4013_p13), %v3187_v25, %v3195_v30 }
 0x248   : > { %3169 = vst [vmem:[#allocation2 + $0x10] sm:$0xff] %v3161_v44  ;;  %v3204_v44 = vrot.slane (!%p4013_p13), %v3187_v25, %v3203_v33 }
 0x249   : > { %3170 = vst [vmem:[#allocation2 + $0x18] sm:$0xff] %v3162_v21  ;;  %v3208_v21 = vrot.slane (!%p4013_p13), %v3187_v25, %v3207_v36 }
 0x24f   : > { %v3181_v27 = vld [vmem:[#allocation2 + $0x10] sm:$0xff] (!%p4013_p13) }
 0x250   : > { %v3182_v34 = vld [vmem:[#allocation2 + $0x18] sm:$0xff] (!%p4013_p13) }
 0x281   : > { %v2947_v32 = vpop.f32.mrb[12].mxu0 }
 0x282   : > { %v2988_v28 = vpop.f32.mrb[12].mxu1  ;;  %v2949_v8 = vpop.f32.mrb[13].mxu0 }
 0x283   : > { %v2989_v45 = vadd.f32 %v2988_v28, %v2947_v32  ;;  %v2990_v46 = vpop.f32.mrb[13].mxu1  ;;  %v2951_v47 = vpop.f32.mrb[14].mxu0  ;;  %v3212_v32 = vrot.slane (!%p4013_p13), %v3187_v25, %v3211_v37  ;;  %v3216_v28 = vrot.slane (!%p4013_p13), %v3187_v25, %v3215_v17 }
 0x284   : > { %v2991_v48 = vadd.f32 %v2990_v46, %v2949_v8  ;;  %v2992_v14 = vpop.f32.mrb[14].mxu1  ;;  %v2952_v49 = vpop.f32.mrb[15].mxu0  ;;  %v3220_v8 = vrot.slane (!%p4013_p13), %v3187_v25, %v3219_v38  ;;  %v3230_v46 = vadd.f32 (!%p4013_p13), %v3196_v43, %v3180_v26  ;;  %v3231_v47 = vadd.f32 (!%p4013_p13), %v3200_v60, %v3181_v27 }
 0x285   : > { %v2993_v50 = vpop.f32.mrb[15].mxu1 }
 0x2c1   : > { %v3029_v53 = vpop.f32.mrb[16].mxu0 }
 0x2c2   : > { %v3030_v54 = vadd.f32 %v3029_v53, %v2989_v45  ;;  %v3070_v56 = vpop.f32.mrb[16].mxu1  ;;  %v3031_v58 = vpop.f32.mrb[17].mxu0  ;;  %v3229_v45 = vadd.f32 (!%p4013_p13), %v3192_v42, %v3179_v24 }
 0x2c3   : > { %v3032_v61 = vadd.f32 %v3031_v58, %v2991_v48  ;;  %v3072_v62 = vpop.f32.mrb[17].mxu1  ;;  %v3033_v63 = vpop.f32.mrb[18].mxu0  ;;  %v3232_v48 = vadd.f32 (!%p4013_p13), %v3204_v44, %v3182_v34 }
 0x2c4   : > { %v3163_v0 = vadd.f32 %v3030_v54, %v359_v52  ;;  %v3074_v1 = vpop.f32.mrb[18].mxu1  ;;  %v3034_v2 = vpop.f32.mrb[19].mxu0  ;;  %v3287_v63 = vld [vmem:[#allocation9] sm:$0x77] (!%p4013_p13) }
 0x2c5   : > { %v3164_v3 = vadd.f32 %v3032_v61, %v360_v57  ;;  %v3075_v4 = vpop.f32.mrb[19].mxu1  ;;  %v4015_v1 = vcombine.high (!%p4013_p13), %v3287_v63, %v3287_v63 }
 0x2c6   : > { %3171 = vst [vmem:[#allocation2 + $0x20] sm:$0xff] %v3163_v0  ;;  %v3289_v0 = vld [vmem:[#allocation9 + $0x10] sm:$0x77] (!%p4013_p13) }
 0x2c7   : > { %3172 = vst [vmem:[#allocation2 + $0x28] sm:$0xff] %v3164_v3  ;;  %v4019_v2 = vcombine.high (!%p4013_p13), %v3289_v0, %v3289_v0  ;;  %v4014_v3 = vcombine.low (!%p4013_p13), %v3287_v63, %v3287_v63  ;;  %v4018_v4 = vcombine.low (!%p4013_p13), %v3289_v0, %v3289_v0  ;;  %3319 = vmatprep.subr.bf16.mxu1 (!%p4013_p13), %v4015_v1 }
 0x2c9   : > { %3399 = vmatprep.subr.bf16.mxu0 (!%p4013_p13), %v4019_v2  ;;  %3320 = vmatpush1.bf16.xpose.msra.mxu1 (!%p4013_p13), %v4014_v3 }
 0x2ca   : > { %3400 = vmatpush1.bf16.xpose.msra.mxu0 (!%p4013_p13), %v4018_v4 }
 0x2cd   : > { %v3183_v35 = vld [vmem:[#allocation2 + $0x20] sm:$0xff] (!%p4013_p13) }
 0x2ce   : > { %v3184_v39 = vld [vmem:[#allocation2 + $0x28] sm:$0xff] (!%p4013_p13)  ;;  %v3233_v14 = vadd.f32 (!%p4013_p13), %v3208_v21, %v3183_v35 }
 0x2cf   : > { %v3234_v49 = vadd.f32 (!%p4013_p13), %v3212_v32, %v3184_v39 }
 0x2d0   : > { %v3237_v53 = vmax.f32 (!%p4013_p13), %v3229_v45, %v3233_v14 }
 0x2d1   : > { %v3238_v54 = vmax.f32 (!%p4013_p13), %v3230_v46, %v3234_v49 }
 0x2d3   : > { %v3241_v58 = vmax.f32 (!%p4013_p13), %v3237_v53, %v3238_v54 }
 0x301   : > { %v3111_v5 = vpop.f32.mrb[20].mxu0 }
 0x302   : > { %v3112_v6 = vadd.f32 %v3111_v5, %v3070_v56  ;;  %v3152_v7 = vpop.f32.mrb[20].mxu1  ;;  %v3113_v9 = vpop.f32.mrb[21].mxu0  ;;  %v3288_v5 = vld [vmem:[#allocation9 + $0x8] sm:$0x77] (!%p4013_p13) }
 0x303   : > { %v3114_v11 = vadd.f32 %v3113_v9, %v3072_v62  ;;  %v3154_v12 = vpop.f32.mrb[21].mxu1  ;;  %v3115_v13 = vpop.f32.mrb[22].mxu0  ;;  %3178 = sbr.rel (%p4013_p13) target bundleno = 1187 (0x4a3), region = 68  ;;  %v4016_v34 = vcombine.low (!%p4013_p13), %v3288_v5, %v3288_v5 }
 0x304   : > { %v3153_v15 = vadd.f32 %v3152_v7, %v3112_v6  ;;  %v3156_v18 = vpop.f32.mrb[22].mxu1  ;;  %v3116_v19 = vpop.f32.mrb[23].mxu0  ;;  %v4017_v6 = vcombine.high (!%p4013_p13), %v3288_v5, %v3288_v5  ;;  %v3290_v7 = vld [vmem:[#allocation9 + $0x18] sm:$0x77] (!%p4013_p13) }
 0x305   : > { %v3155_v51 = vadd.f32 %v3154_v12, %v3114_v11  ;;  %v3157_v20 = vpop.f32.mrb[23].mxu1  ;;  %v4021_v9 = vcombine.high (!%p4013_p13), %v3290_v7, %v3290_v7  ;;  %v4020_v37 = vcombine.low (!%p4013_p13), %v3290_v7, %v3290_v7 }
 0x306   : > { %v3165_v22 = vadd.f32 %v3153_v15, %v361_v10  ;;  %3359 = vmatprep.subr.bf16.mxu1 (!%p4013_p13), %v4017_v6 }
 0x307   : > { %v3166_v23 = vadd.f32 %v3155_v51, %v362_v16  ;;  %3439 = vmatprep.subr.bf16.mxu0 (!%p4013_p13), %v4021_v9 }
 0x308   : > { %3173 = vst [vmem:[#allocation2 + $0x30] sm:$0xff] %v3165_v22 }
 0x309   : > { %3174 = vst [vmem:[#allocation2 + $0x38] sm:$0xff] %v3166_v23 }
 0x30f   : > { %v3185_v40 = vld [vmem:[#allocation2 + $0x30] sm:$0xff] }
 0x310   : > { %v3186_v41 = vld [vmem:[#allocation2 + $0x38] sm:$0xff]  ;;  %v3235_v50 = vadd.f32 %v3216_v28, %v3185_v40 }
 0x311   : > { %v3236_v52 = vadd.f32 %v3220_v8, %v3186_v41 }
 0x312   : > { %v3239_v56 = vmax.f32 %v3231_v47, %v3235_v50 }
 0x313   : > { %v3240_v57 = vmax.f32 %v3232_v48, %v3236_v52 }
 0x315   : > { %v3242_v61 = vmax.f32 %v3239_v56, %v3240_v57  ;;  %v4022_v57 = vld [vmem:[#allocation11] ss:$0 sm:$0xff] }
 0x317   : > { %v3243_v62 = vmax.f32 %v3241_v58, %v3242_v61 }
 0x319   : > { %3244 = vmax.xlane.f32.xlu0 %v3243_v62 }
 0x3a6   : > { %v3245_v10 = vpop.xlane.xlu0 %3244 }
 0x3a7   : > { %v3248_v11 = vsub.f32 %v3231_v47, %v3245_v10  ;;  %v3247_v12 = vsub.f32 %v3230_v46, %v3245_v10  ;;  %v3251_v13 = vsub.f32 %v3234_v49, %v3245_v10  ;;  %v3246_v15 = vsub.f32 %v3229_v45, %v3245_v10 }
 0x3a8   : > { %v3250_v16 = vsub.f32 %v3233_v14, %v3245_v10  ;;  %v3249_v18 = vsub.f32 %v3232_v48, %v3245_v10  ;;  %v3253_v22 = vsub.f32 %v3236_v52, %v3245_v10  ;;  %v3252_v25 = vsub.f32 %v3235_v50, %v3245_v10 }
 0x3a9   : > { %v3258_v19 = vmul.f32 1.442695, %v3248_v11  ;;  %v3256_v51 = vmul.f32 1.442695, %v3247_v12  ;;  %v3264_v20 = vmul.f32 1.442695, %v3251_v13 }
 0x3aa   : > { %v3254_v23 = vmul.f32 1.442695, %v3246_v15  ;;  %v3262_v59 = vmul.f32 1.442695, %v3250_v16  ;;  %v3260_v55 = vmul.f32 1.442695, %v3249_v18 }
 0x3ab   : > { %4153 = vpow2.f32 %v3258_v19  ;;  %v3268_v24 = vmul.f32 1.442695, %v3253_v22  ;;  %v3266_v26 = vmul.f32 1.442695, %v3252_v25 }
 0x3ac   : > { %4155 = vpow2.f32 %v3256_v51 }
 0x3ad   : > { %4157 = vpow2.f32 %v3264_v20 }
 0x3ae   : > { %4159 = vpow2.f32 %v3254_v23 }
 0x3af   : > { %4161 = vpow2.f32 %v3262_v59 }
 0x3b0   : > { %4163 = vpow2.f32 %v3260_v55 }
 0x3b1   : > { %4165 = vpow2.f32 %v3268_v24 }
 0x3b2   : > { %4167 = vpow2.f32 %v3266_v26 }
 0x3b5   : > { %v4154_v27 = vpop.eup %4153 }
 0x3b6   : > { %v4156_v29 = vpop.eup %4155  ;;  %v3281_v46 = vpack.c.bf16 %v4154_v27, %v4154_v27 }
 0x3b7   : > { %v4158_v30 = vpop.eup %4157  ;;  %v3280_v31 = vpack.c.bf16 %v4156_v29, %v4156_v29 }
 0x3b8   : > { %v4160_v33 = vpop.eup %4159  ;;  %v3284_v35 = vpack.c.bf16 %v4158_v30, %v4158_v30 }
 0x3b9   : > { %v4162_v36 = vpop.eup %4161  ;;  %3351 = vmatprep.mubr.bf16.mxu1 %v3280_v31  ;;  %v3279_v17 = vpack.c.bf16 %v4160_v33, %v4160_v33  ;;  %v3270_v38 = vadd.f32 %v4160_v33, %v4156_v29 }
 0x3ba   : > { %v4164_v39 = vpop.eup %4163  ;;  %3431 = vmatprep.mubr.bf16.mxu0 %v3284_v35  ;;  %v3283_v40 = vpack.c.bf16 %v4162_v36, %v4162_v36 }
 0x3bb   : > { %v4166_v41 = vpop.eup %4165  ;;  %3352 = vmatmul.mubr.bf16.vlgmr.msra.gmra.mrb[0].mxu1 %v3279_v17  ;;  %v3282_v42 = vpack.c.bf16 %v4164_v39, %v4164_v39  ;;  %v3271_v43 = vadd.f32 %v4154_v27, %v3270_v38 }
 0x3bc   : > { %3360 = vmatpush1.bf16.xpose.msra.mxu1 %v4016_v34  ;;  %3432 = vmatmul.mubr.bf16.vlgmr.msra.gmra.mrb[0].mxu0 %v3283_v40  ;;  %v3286_v60 = vpack.c.bf16 %v4166_v41, %v4166_v41  ;;  %v4168_v28 = vpop.eup %4167 }
 0x3bd   : > { %3440 = vmatpush1.bf16.xpose.msra.mxu0 %v4020_v37  ;;  %3391 = vmatprep.mubr.bf16.mxu1 %v3282_v42  ;;  %v3272_v44 = vadd.f32 %v4164_v39, %v3271_v43  ;;  %v3285_v47 = vpack.c.bf16 %v4168_v28, %v4168_v28 }
 0x3be   : > { %3471 = vmatprep.mubr.bf16.mxu0 %v3286_v60 }
 0x3bf   : > { %v3273_v21 = vadd.f32 %v4162_v36, %v3272_v44 }
 0x3c1   : > { %v3274_v32 = vadd.f32 %v4158_v30, %v3273_v21 }
 0x3c3   : > { %v3275_v8 = vadd.f32 %v4168_v28, %v3274_v32 }
 0x3c5   : > { %v3276_v45 = vadd.f32 %v4166_v41, %v3275_v8 }
 0x3c7   : > { %3277 = vadd.xlane.f32.xlu0 %v3276_v45  ;;  %3392 = vmatmul.mubr.bf16.vlgmr.msra.gmra.mrb[0].mxu1 %v3281_v46 }
 0x3c8   : > { %3472 = vmatmul.mubr.bf16.vlgmr.msra.gmra.mrb[0].mxu0 %v3285_v47 }
 0x454   : > { %v3278_v48 = vpop.xlane.xlu0 %3277 }
 0x455   : > { %4169 = vrcp.f32 %v3278_v48 }
 0x45f   : > { %v4170_v56 = vpop.eup %4169 }
 0x49a   : > { %v3393_v14 = vpop.f32.mrb[0].mxu1 }
 0x49b   : > { %v3473_v49 = vpop.f32.mrb[0].mxu0  ;;  %v3395_v50 = vpop.f32.mrb[1].mxu1 }
 0x49c   : > { %v4031_v52 = vadd.f32 %v3473_v49, %v3393_v14  ;;  %v3475_v53 = vpop.f32.mrb[1].mxu0  ;;  %v3396_v54 = vpop.f32.mrb[2].mxu1 }
 0x49d   : > { %v3476_v58 = vpop.f32.mrb[2].mxu0  ;;  %v3397_v61 = vpop.f32.mrb[3].mxu1 }
 0x49e   : > { %v3480_v62 = vmul.f32 %v4170_v56, %v4031_v52  ;;  %v3477_v63 = vpop.f32.mrb[3].mxu0 }
 0x4a0   : > { %v3488_v0 = vadd.f32 %v4022_v57, %v3480_v62 }
 0x4a2   : > { %3490 = vst.msk [vmem:[#allocation12] sm:$0xff] %vm3489_vm0, %v3488_v0 }
 0x4a3 PF: > { %p4088_p2 = scmp.eq.s32.totalorder %s4477_s24, 3  ;;  %s4417_s21 = smov [#allocation12]  }
 0x4a4   : > { %s3500_s25 = sshll.u32 %s4417_s21, 4  ;;  %s3501_s25 = int_to_ptr.vmem [resolvable:$true] %s3500_s25 }
 0x4a5   : > { %s4315_s26 = scalar_lea.vmem %s3501_s25, 128  ;;  %p4322_p8 = scmp.lt.s32.totalorder %s3501_s25, %s3501_s25 }
 0x4a6   : > { %p4316_p3 = scmp.ne.s32.totalorder %s3501_s25, %s4315_s26  ;;  %p4323_p10 = scmp.lt.s32.totalorder %s4315_s26, %s4315_s26 }
 0x4a8   : > { %p4317_p0 = pnand %p4316_p3, %p4088_p2  ;;  %p4324_p12 = por %p4323_p10, %p4322_p8 }
 0x4aa   : > { %p4318_p6 = pneg %p4317_p0 }
 0x4ac   : > { %p4325_p9 = pnand %p4324_p12, %p4318_p6 }
 0x4ae   : > { %4328 = shalt.err (!%p4325_p9)
}
 0x4af   : > { %s4329_s13 = scalar_lea.hbm %s5177_s5, 128 }
 0x4b0   : > { %p4330_p11 = scmp.ne.s32.totalorder %s5177_s5, %s4329_s13  ;;  %p4335_p5 = scmp.lt.u32.totalorder %s4329_s13, %s5177_s5 }
 0x4b2   : > { %p4331_p1 = pnand %p4330_p11, %p4088_p2 }
 0x4b4   : > { %p4332_p4 = pneg %p4331_p1 }
 0x4b6   : > { %p4337_p7 = pnand %p4335_p5, %p4332_p4 }
 0x4b8   : > { %4340 = shalt.err (!%p4337_p7)
}
 0x4b9   : > { %4061 = dma.vmem_to_hbm [thread:$0]  (%p4088_p2), %s3501_s25, 128, %s5177_s5, [#allocation5]  }
 0x4ba   : > { %4382 = dma.done.wait (%p4088_p2), [#allocation5], 128  }
 0x4bb   : > { %4384 = vsyncadd (%p4088_p2), [#allocation5], 4294967168 }
 0x4bc PF: > { %s23_s23 = sadd.s32 1, %s4407_s23   ;;  %s5192_s10 = smov %s4596_s18 }
 0x4bd   : > { %p20_p13 = scmp.ge.s32.totalorder %s23_s23, 6   ;;  %s5193_s18 = smov %s4391_s19 }
 0x4be   : > { %s5194_s19 = smov %s4395_s20  ;;  %s5195_s20 = smov %s5192_s10 }
 0x4bf   : > { %s5196_s21 = smov %s4403_s22  ;;  %s5197_s22 = smov %s5199_s28 }
 0x4c0   :  { %22 = sbr.rel (!%p20_p13) target bundleno = 8 (0x8), region = 111 }
 0x4c7   :  { %3513 = vsyncpa [#allocation4], 1 }
 0x4c8   :  { %3515 = vsyncpa [#allocation4 + $0x1], 1 }
 0x4c9   :  { %3516 = vsyncpa [#allocation7], 1 }
 0x4ca   :  { %3518 = vsyncpa [#allocation7 + $0x1], 1 }
 0x4cb   :  { %3519 = vsyncpa [#allocation10], 1 }
 0x4cc   :  { %3520 = vsyncpa [#allocation5], 1 }
 0x4cd   :  { %3522 = vsyncpa [#allocation5 + $0x1], 1 }

</bundles_post_ra>
